<compile_context>
chip_gen: v6e
topology: v6e:2x2x1
jax: 0.10.0
libtpu: 0.0.40
codegen_flags: <defaults>
</compile_context>

<pallas_src>
import math
import functools

import jax
import jax.numpy as jnp
from jax import lax
from jax.experimental import pallas as pl
from jax.experimental.pallas import tpu as pltpu


# ----------------------------- helpers traced inside the kernel ------------------------------

def _layernorm(x, gamma, beta, eps=1e-6):
    # x: (S, D) f32; gamma/beta: (1, D); biased variance like nn.LayerNorm.
    mean = jnp.mean(x, axis=-1, keepdims=True)
    var = jnp.mean((x - mean) ** 2, axis=-1, keepdims=True)
    return (x - mean) * lax.rsqrt(var + eps) * gamma + beta


def _attention_heads(q_b, k_b, v_b, neg_mask, aw_ref, ctx_ref, *, num_heads, depth):
    """Per-head scaled-dot-product attention on lane-contiguous head slices.

    q_b: (Sq, D) bf16 (already scaled by 1/sqrt(depth) via the folded Wq),
    k_b/v_b: (Sk, D) bf16, neg_mask: (Sq, Sk) f32 pre-multiplied by -1e9.
    aw_ref: (1, H, Sq, Sk) output ref (bf16); ctx_ref: (Sq, D) f32 VMEM scratch.
    Returns the assembled (Sq, D) f32 context.
    """
    for h in range(num_heads):                      # static loop; lane-contiguous slices
        lo, hi = h * depth, (h + 1) * depth
        # scores (Sq, Sk): contract on depth without materializing k^T.
        s = lax.dot_general(
            q_b[:, lo:hi], k_b[:, lo:hi],
            dimension_numbers=(((1,), (1,)), ((), ())),
            preferred_element_type=jnp.float32)
        s = s + neg_mask
        s = s - jnp.max(s, axis=-1, keepdims=True)
        e = jnp.exp(s)
        inv = pl.reciprocal(jnp.sum(e, axis=-1, keepdims=True), approx=True)
        attn = e * inv                                          # (Sq, Sk) f32
        aw_ref[0, h] = attn.astype(aw_ref.dtype)                # lane-dense per-head store
        ctx_ref[:, lo:hi] = jnp.dot(attn.astype(jnp.bfloat16), v_b[:, lo:hi],
                                    preferred_element_type=jnp.float32)
    return ctx_ref[...]                                         # (Sq, D) f32


# ----------------------------------- the Pallas kernel ---------------------------------------

def decoder_block_kernel(x_ref, enc_ref, la_ref, pad_ref,
                         wqkv1_ref, bqkv1_ref, wo1_ref, bo1_ref,
                         wq2_ref, bq2_ref, wkv2_ref, bkv2_ref, wo2_ref, bo2_ref,
                         fw1_ref, fb1_ref, fw2_ref, fb2_ref,
                         lng_ref, lnb_ref,
                         out_ref, aw1_ref, aw2_ref,
                         ctx_ref,
                         *, num_heads, depth):
    D = num_heads * depth
    x = x_ref[0]               # (S, D)  f32
    enc = enc_ref[0]           # (Se, D) f32
    la_neg = la_ref[...]       # (S, S)   already * -1e9
    pad_neg = pad_ref[...]     # (S, Se)  already * -1e9

    # --- self attention (fused QKV projection) + add & norm ---
    x_b = x.astype(jnp.bfloat16)                                # single bf16 cast of x
    qkv1 = jnp.dot(x_b, wqkv1_ref[...],
                   preferred_element_type=jnp.float32) + bqkv1_ref[...]   # (S, 3D) f32
    qkv1_b = qkv1.astype(jnp.bfloat16)
    ctx1 = _attention_heads(qkv1_b[:, :D], qkv1_b[:, D:2 * D], qkv1_b[:, 2 * D:],
                            la_neg, aw1_ref, ctx_ref,
                            num_heads=num_heads, depth=depth)
    attn1 = jnp.dot(ctx1.astype(jnp.bfloat16), wo1_ref[...],
                    preferred_element_type=jnp.float32) + bo1_ref[...]
    out1 = _layernorm(attn1 + x, lng_ref[0:1, :], lnb_ref[0:1, :])

    # --- cross attention (fused KV projection of encoder output) + add & norm ---
    enc_b = enc.astype(jnp.bfloat16)                            # single bf16 cast of enc
    kv2 = jnp.dot(enc_b, wkv2_ref[...],
                  preferred_element_type=jnp.float32) + bkv2_ref[...]     # (Se, 2D) f32
    q2 = jnp.dot(out1.astype(jnp.bfloat16), wq2_ref[...],
                 preferred_element_type=jnp.float32) + bq2_ref[...]       # (S, D) f32
    kv2_b = kv2.astype(jnp.bfloat16)
    ctx2 = _attention_heads(q2.astype(jnp.bfloat16), kv2_b[:, :D], kv2_b[:, D:],
                            pad_neg, aw2_ref, ctx_ref,
                            num_heads=num_heads, depth=depth)
    attn2 = jnp.dot(ctx2.astype(jnp.bfloat16), wo2_ref[...],
                    preferred_element_type=jnp.float32) + bo2_ref[...]
    out2 = _layernorm(attn2 + out1, lng_ref[1:2, :], lnb_ref[1:2, :])

    # --- position-wise feed-forward + add & norm ---
    h = jnp.dot(out2.astype(jnp.bfloat16), fw1_ref[...],
                preferred_element_type=jnp.float32) + fb1_ref[...]
    h = jnp.maximum(h, 0.0)
    ffn = jnp.dot(h.astype(jnp.bfloat16), fw2_ref[...],
                  preferred_element_type=jnp.float32) + fb2_ref[...]
    out3 = _layernorm(out2 + ffn, lng_ref[2:3, :], lnb_ref[2:3, :])

    out_ref[0] = out3.astype(out_ref.dtype)


# ------------------------------------- wrapper ------------------------------------------------

def decoder_block(x, enc, la_mask, pad_mask, params, *, num_heads,
                  aw_dtype=jnp.bfloat16):
    B, S, D = x.shape
    Se = enc.shape[1]
    depth = D // num_heads
    d_ff = params["ffn_w1"].shape[1]
    scale = 1.0 / math.sqrt(depth)

    # ---- trace-time weight packing (grid-invariant constants) ----
    # Self-attn: Wq (pre-scaled) | Wk | Wv fused to (D, 3D); output proj Wo separate.
    a1w, a1b = params["a1_w"], params["a1_b"]
    wqkv1 = jnp.concatenate([a1w[0] * scale, a1w[1], a1w[2]], axis=1).astype(jnp.bfloat16)
    bqkv1 = jnp.concatenate([a1b[0] * scale, a1b[1], a1b[2]]).reshape(1, 3 * D)
    wo1 = a1w[3].astype(jnp.bfloat16)
    bo1 = a1b[3].reshape(1, D)
    # Cross-attn: Wq (pre-scaled) separate (query = out1), Wk | Wv fused to (D, 2D).
    a2w, a2b = params["a2_w"], params["a2_b"]
    wq2 = (a2w[0] * scale).astype(jnp.bfloat16)
    bq2 = (a2b[0] * scale).reshape(1, D)
    wkv2 = jnp.concatenate([a2w[1], a2w[2]], axis=1).astype(jnp.bfloat16)
    bkv2 = jnp.concatenate([a2b[1], a2b[2]]).reshape(1, 2 * D)
    wo2 = a2w[3].astype(jnp.bfloat16)
    bo2 = a2b[3].reshape(1, D)
    # FFN weights bf16, biases f32 lane-major 2-D.
    ffn_w1 = params["ffn_w1"].astype(jnp.bfloat16)
    ffn_w2 = params["ffn_w2"].astype(jnp.bfloat16)
    ffn_b1 = params["ffn_b1"].reshape(1, d_ff)
    ffn_b2 = params["ffn_b2"].reshape(1, D)
    # Pre-scale masks once (additive -1e9 like the PyTorch reference).
    la_neg = la_mask * jnp.float32(-1e9)
    pad_neg = pad_mask * jnp.float32(-1e9)

    # Grid-invariant operands: single-buffer (block index never changes).
    def const_spec(shape):
        return pl.BlockSpec(shape, lambda b: (0,) * len(shape),
                            pipeline_mode=pl.Buffered(1))

    kernel = functools.partial(decoder_block_kernel, num_heads=num_heads, depth=depth)

    # ---- chip-aware VMEM budget ----
    f32, bf16 = 4, 2
    act_bytes = 2 * (f32 * (2 * S * D + Se * D)                    # x, out, enc (dbl-buffered)
                     + bf16 * num_heads * (S * S + S * Se))        # aw1, aw2 (dbl-buffered)
    w_bytes = bf16 * (3 * D * D + D * D + D * D + 2 * D * D + D * D
                      + D * d_ff + d_ff * D)
    b_bytes = f32 * (3 * D + D + D + 2 * D + D + d_ff + D + 6 * D)
    mask_bytes = f32 * (S * S + S * Se)
    interm_bytes = f32 * (13 * S * D + 2 * S * d_ff
                          + 4 * S * max(S, Se) + 3 * Se * D)
    scratch_bytes = f32 * S * D
    need = act_bytes + w_bytes + b_bytes + mask_bytes + interm_bytes + scratch_bytes
    try:
        vmem_cap = int(getattr(pltpu.get_tpu_info(), "vmem_capacity_bytes",
                               64 * 1024 * 1024))
    except Exception:
        vmem_cap = 64 * 1024 * 1024                                # conservative (v7x-safe)
    vmem_limit = int(min(max(need, 32 * 1024 * 1024), int(0.78 * vmem_cap)))

    return pl.pallas_call(
        kernel,
        out_shape=(
            jax.ShapeDtypeStruct((B, S, D), x.dtype),
            jax.ShapeDtypeStruct((B, num_heads, S, S), aw_dtype),
            jax.ShapeDtypeStruct((B, num_heads, S, Se), aw_dtype),
        ),
        grid_spec=pltpu.PrefetchScalarGridSpec(
            num_scalar_prefetch=0,
            grid=(B,),
            in_specs=[
                pl.BlockSpec((1, S, D), lambda b: (b, 0, 0)),    # x
                pl.BlockSpec((1, Se, D), lambda b: (b, 0, 0)),   # encoder output
                const_spec((S, S)),          # look-ahead mask (* -1e9)
                const_spec((S, Se)),         # padding mask    (* -1e9)
                const_spec((D, 3 * D)),      # self-attn fused Wqkv (bf16)
                const_spec((1, 3 * D)),      # self-attn fused bqkv
                const_spec((D, D)),          # self-attn Wo (bf16)
                const_spec((1, D)),          # self-attn bo
                const_spec((D, D)),          # cross-attn Wq (bf16, pre-scaled)
                const_spec((1, D)),          # cross-attn bq (pre-scaled)
                const_spec((D, 2 * D)),      # cross-attn fused Wkv (bf16)
                const_spec((1, 2 * D)),      # cross-attn fused bkv
                const_spec((D, D)),          # cross-attn Wo (bf16)
                const_spec((1, D)),          # cross-attn bo
                const_spec((D, d_ff)),       # ffn w1 (bf16)
                const_spec((1, d_ff)),       # ffn b1
                const_spec((d_ff, D)),       # ffn w2 (bf16)
                const_spec((1, D)),          # ffn b2
                const_spec((3, D)),          # layernorm gammas
                const_spec((3, D)),          # layernorm betas
            ],
            out_specs=[
                pl.BlockSpec((1, S, D), lambda b: (b, 0, 0)),
                pl.BlockSpec((1, num_heads, S, S), lambda b: (b, 0, 0, 0)),
                pl.BlockSpec((1, num_heads, S, Se), lambda b: (b, 0, 0, 0)),
            ],
            scratch_shapes=[pltpu.VMEM((S, D), jnp.float32)],    # per-head context slab
        ),
        compiler_params=pltpu.CompilerParams(
            dimension_semantics=("parallel",),     # independent batch steps -> megacore
            vmem_limit_bytes=vmem_limit),
    )(x, enc, la_neg, pad_neg,
      wqkv1, bqkv1, wo1, bo1,
      wq2, bq2, wkv2, bkv2, wo2, bo2,
      ffn_w1, ffn_b1, ffn_w2, ffn_b2,
      params["ln_g"], params["ln_b"])


# ------------------------------- pure-JAX reference (f32) ------------------------------------

def reference(x, enc, la_mask, pad_mask, p, num_heads):
    def mha(q_in, k_in, v_in, w, b, mask):
        B, Sq, D = q_in.shape
        Sk = k_in.shape[1]
        dh = D // num_heads
        q = (q_in @ w[0] + b[0]).reshape(B, Sq, num_heads, dh).transpose(0, 2, 1, 3)
        k = (k_in @ w[1] + b[1]).reshape(B, Sk, num_heads, dh).transpose(0, 2, 1, 3)
        v = (v_in @ w[2] + b[2]).reshape(B, Sk, num_heads, dh).transpose(0, 2, 1, 3)
        s = jnp.einsum("bhqd,bhkd->bhqk", q, k) / math.sqrt(dh)
        s = s + mask[None, None] * (-1e9)
        a = jax.nn.softmax(s, axis=-1)
        o = jnp.einsum("bhqk,bhkd->bhqd", a, v).transpose(0, 2, 1, 3).reshape(B, Sq, D)
        return o @ w[3] + b[3], a

    def ln(z, g, bt):
        m = z.mean(-1, keepdims=True)
        v = ((z - m) ** 2).mean(-1, keepdims=True)
        return (z - m) / jnp.sqrt(v + 1e-6) * g + bt

    a1, w1 = mha(x, x, x, p["a1_w"], p["a1_b"], la_mask)
    o1 = ln(a1 + x, p["ln_g"][0], p["ln_b"][0])
    a2, w2 = mha(o1, enc, enc, p["a2_w"], p["a2_b"], pad_mask)
    o2 = ln(a2 + o1, p["ln_g"][1], p["ln_b"][1])
    f = jnp.maximum(o2 @ p["ffn_w1"] + p["ffn_b1"], 0.0) @ p["ffn_w2"] + p["ffn_b2"]
    o3 = ln(o2 + f, p["ln_g"][2], p["ln_b"][2])
    return o3, w1, w2


# ----------------------------------------- main -----------------------------------------------

if __name__ == "__main__":
    B, S, Se, D, H, DFF = 2, 8, 8, 32, 4, 64

    key = jax.random.PRNGKey(0)
    ks = jax.random.split(key, 12)

    x = jax.random.normal(ks[0], (B, S, D), dtype=jnp.float32)
    enc = jax.random.normal(ks[1], (B, Se, D), dtype=jnp.float32)

    # causal look-ahead mask (1.0 where masked), zero padding mask
    la_mask = jnp.triu(jnp.ones((S, S), jnp.float32), k=1)
    pad_mask = jnp.zeros((S, Se), jnp.float32)

    wscale = 0.1
    params = {
        "a1_w": jax.random.normal(ks[2], (4, D, D), jnp.float32) * wscale,
        "a1_b": jax.random.normal(ks[3], (4, D), jnp.float32) * wscale,
        "a2_w": jax.random.normal(ks[4], (4, D, D), jnp.float32) * wscale,
        "a2_b": jax.random.normal(ks[5], (4, D), jnp.float32) * wscale,
        "ffn_w1": jax.random.normal(ks[6], (D, DFF), jnp.float32) * wscale,
        "ffn_b1": jax.random.normal(ks[7], (DFF,), jnp.float32) * wscale,
        "ffn_w2": jax.random.normal(ks[8], (DFF, D), jnp.float32) * wscale,
        "ffn_b2": jax.random.normal(ks[9], (D,), jnp.float32) * wscale,
        "ln_g": jnp.ones((3, D), jnp.float32),
        "ln_b": jnp.zeros((3, D), jnp.float32),
    }

    out, aw1, aw2 = decoder_block(x, enc, la_mask, pad_mask, params, num_heads=H)
    jax.block_until_ready((out, aw1, aw2))

    r_out, r_aw1, r_aw2 = reference(x, enc, la_mask, pad_mask, params, H)
    # Tolerances account for bf16 MXU operands (f32 accumulation), bf16 attention-weight
    # outputs, and the EUP approx reciprocal in the softmax.
    assert jnp.allclose(out, r_out, atol=5e-2, rtol=5e-2)
    assert jnp.allclose(aw1.astype(jnp.float32), r_aw1, atol=2e-2, rtol=2e-2)
    assert jnp.allclose(aw2.astype(jnp.float32), r_aw2, atol=2e-2, rtol=2e-2)

    print("KERNEL_OK")
</pallas_src>

<mosaic_0001>
module attributes {stable_mosaic.version = 11 : i64} {
  func.func @decoder_block_kernel(%arg0: i32, %arg1: memref<1x8x32xf32, #tpu.memory_space<vmem>>, %arg2: memref<1x8x32xf32, #tpu.memory_space<vmem>>, %arg3: memref<8x8xf32, #tpu.memory_space<vmem>>, %arg4: memref<8x8xf32, #tpu.memory_space<vmem>>, %arg5: memref<32x96xbf16, #tpu.memory_space<vmem>>, %arg6: memref<1x96xf32, #tpu.memory_space<vmem>>, %arg7: memref<32x32xbf16, #tpu.memory_space<vmem>>, %arg8: memref<1x32xf32, #tpu.memory_space<vmem>>, %arg9: memref<32x32xbf16, #tpu.memory_space<vmem>>, %arg10: memref<1x32xf32, #tpu.memory_space<vmem>>, %arg11: memref<32x64xbf16, #tpu.memory_space<vmem>>, %arg12: memref<1x64xf32, #tpu.memory_space<vmem>>, %arg13: memref<32x32xbf16, #tpu.memory_space<vmem>>, %arg14: memref<1x32xf32, #tpu.memory_space<vmem>>, %arg15: memref<32x64xbf16, #tpu.memory_space<vmem>>, %arg16: memref<1x64xf32, #tpu.memory_space<vmem>>, %arg17: memref<64x32xbf16, #tpu.memory_space<vmem>>, %arg18: memref<1x32xf32, #tpu.memory_space<vmem>>, %arg19: memref<3x32xf32, #tpu.memory_space<vmem>>, %arg20: memref<3x32xf32, #tpu.memory_space<vmem>>, %arg21: memref<1x8x32xf32, #tpu.memory_space<vmem>>, %arg22: memref<1x4x8x8xbf16, #tpu.memory_space<vmem>>, %arg23: memref<1x4x8x8xbf16, #tpu.memory_space<vmem>>, %arg24: memref<8x32xf32, #tpu.memory_space<vmem>>) attributes {dimension_semantics = [#tpu.dimension_semantics<parallel>], iteration_bounds = array<i64: 2>, scalar_prefetch = 0 : i64, scratch_operands = 1 : i64, tpu.core_type = #tpu.core_type<tc>, window_params = [{transform_indices = @transform_0, window_bounds = array<i64: 1, 8, 32>}, {transform_indices = @transform_1, window_bounds = array<i64: 1, 8, 32>}, {pipeline_mode = #tpu.pipeline_mode<synchronous>, transform_indices = @transform_2, window_bounds = array<i64: 8, 8>}, {pipeline_mode = #tpu.pipeline_mode<synchronous>, transform_indices = @transform_3, window_bounds = array<i64: 8, 8>}, {pipeline_mode = #tpu.pipeline_mode<synchronous>, transform_indices = @transform_4, window_bounds = array<i64: 32, 96>}, {pipeline_mode = #tpu.pipeline_mode<synchronous>, transform_indices = @transform_5, window_bounds = array<i64: 1, 96>}, {pipeline_mode = #tpu.pipeline_mode<synchronous>, transform_indices = @transform_6, window_bounds = array<i64: 32, 32>}, {pipeline_mode = #tpu.pipeline_mode<synchronous>, transform_indices = @transform_7, window_bounds = array<i64: 1, 32>}, {pipeline_mode = #tpu.pipeline_mode<synchronous>, transform_indices = @transform_8, window_bounds = array<i64: 32, 32>}, {pipeline_mode = #tpu.pipeline_mode<synchronous>, transform_indices = @transform_9, window_bounds = array<i64: 1, 32>}, {pipeline_mode = #tpu.pipeline_mode<synchronous>, transform_indices = @transform_10, window_bounds = array<i64: 32, 64>}, {pipeline_mode = #tpu.pipeline_mode<synchronous>, transform_indices = @transform_11, window_bounds = array<i64: 1, 64>}, {pipeline_mode = #tpu.pipeline_mode<synchronous>, transform_indices = @transform_12, window_bounds = array<i64: 32, 32>}, {pipeline_mode = #tpu.pipeline_mode<synchronous>, transform_indices = @transform_13, window_bounds = array<i64: 1, 32>}, {pipeline_mode = #tpu.pipeline_mode<synchronous>, transform_indices = @transform_14, window_bounds = array<i64: 32, 64>}, {pipeline_mode = #tpu.pipeline_mode<synchronous>, transform_indices = @transform_15, window_bounds = array<i64: 1, 64>}, {pipeline_mode = #tpu.pipeline_mode<synchronous>, transform_indices = @transform_16, window_bounds = array<i64: 64, 32>}, {pipeline_mode = #tpu.pipeline_mode<synchronous>, transform_indices = @transform_17, window_bounds = array<i64: 1, 32>}, {pipeline_mode = #tpu.pipeline_mode<synchronous>, transform_indices = @transform_18, window_bounds = array<i64: 3, 32>}, {pipeline_mode = #tpu.pipeline_mode<synchronous>, transform_indices = @transform_19, window_bounds = array<i64: 3, 32>}, {transform_indices = @transform_20, window_bounds = array<i64: 1, 8, 32>}, {transform_indices = @transform_21, window_bounds = array<i64: 1, 4, 8, 8>}, {transform_indices = @transform_22, window_bounds = array<i64: 1, 4, 8, 8>}]} {
    %c0 = arith.constant 0 : index
    %c0_0 = arith.constant 0 : index
    %c0_1 = arith.constant 0 : index
    %0 = vector.load %arg1[%c0, %c0_0, %c0_1] : memref<1x8x32xf32, #tpu.memory_space<vmem>>, vector<1x8x32xf32>
    %1 = vector.shape_cast %0 : vector<1x8x32xf32> to vector<8x32xf32>
    %c0_2 = arith.constant 0 : index
    %c0_3 = arith.constant 0 : index
    %c0_4 = arith.constant 0 : index
    %2 = vector.load %arg2[%c0_2, %c0_3, %c0_4] : memref<1x8x32xf32, #tpu.memory_space<vmem>>, vector<1x8x32xf32>
    %3 = vector.shape_cast %2 : vector<1x8x32xf32> to vector<8x32xf32>
    %c0_5 = arith.constant 0 : index
    %c0_6 = arith.constant 0 : index
    %4 = vector.load %arg3[%c0_5, %c0_6] : memref<8x8xf32, #tpu.memory_space<vmem>>, vector<8x8xf32>
    %c0_7 = arith.constant 0 : index
    %c0_8 = arith.constant 0 : index
    %5 = vector.load %arg4[%c0_7, %c0_8] : memref<8x8xf32, #tpu.memory_space<vmem>>, vector<8x8xf32>
    %6 = arith.truncf %1 : vector<8x32xf32> to vector<8x32xbf16>
    %c0_9 = arith.constant 0 : index
    %c0_10 = arith.constant 0 : index
    %7 = vector.load %arg5[%c0_9, %c0_10] : memref<32x96xbf16, #tpu.memory_space<vmem>>, vector<32x96xbf16>
    %cst = arith.constant dense<0.000000e+00> : vector<8x96xf32>
    %8 = tpu.matmul %6, %7, %cst {dimension_numbers = #tpu.dot_dimension_numbers<[1], [0], [0], [1], [0, 0, 1, 1], [], []>} : vector<8x32xbf16>, vector<32x96xbf16>, vector<8x96xf32> -> vector<8x96xf32>
    %c0_11 = arith.constant 0 : index
    %c0_12 = arith.constant 0 : index
    %9 = vector.load %arg6[%c0_11, %c0_12] : memref<1x96xf32, #tpu.memory_space<vmem>>, vector<1x96xf32>
    %10 = vector.broadcast %9 : vector<1x96xf32> to vector<8x96xf32>
    %11 = arith.addf %8, %10 : vector<8x96xf32>
    %12 = arith.truncf %11 : vector<8x96xf32> to vector<8x96xbf16>
    %13 = vector.extract_strided_slice %12 {offsets = [0, 0], sizes = [8, 32], strides = [1, 1]} : vector<8x96xbf16> to vector<8x32xbf16>
    %14 = vector.extract_strided_slice %12 {offsets = [0, 32], sizes = [8, 32], strides = [1, 1]} : vector<8x96xbf16> to vector<8x32xbf16>
    %15 = vector.extract_strided_slice %12 {offsets = [0, 64], sizes = [8, 32], strides = [1, 1]} : vector<8x96xbf16> to vector<8x32xbf16>
    %16 = vector.extract_strided_slice %13 {offsets = [0, 0], sizes = [8, 8], strides = [1, 1]} : vector<8x32xbf16> to vector<8x8xbf16>
    %17 = vector.extract_strided_slice %14 {offsets = [0, 0], sizes = [8, 8], strides = [1, 1]} : vector<8x32xbf16> to vector<8x8xbf16>
    %cst_13 = arith.constant dense<0.000000e+00> : vector<8x8xf32>
    %18 = tpu.matmul %16, %17, %cst_13 {dimension_numbers = #tpu.dot_dimension_numbers<[1], [1], [0], [0], [0, 0, 1, 0], [], []>} : vector<8x8xbf16>, vector<8x8xbf16>, vector<8x8xf32> -> vector<8x8xf32>
    %19 = arith.addf %18, %4 : vector<8x8xf32>
    %cst_14 = arith.constant dense<0xFF800000> : vector<8xf32>
    %20 = vector.multi_reduction <maximumf>, %19, %cst_14 [1] : vector<8x8xf32> to vector<8xf32>
    %21 = vector.shape_cast %20 : vector<8xf32> to vector<8x1xf32>
    %22 = vector.broadcast %21 : vector<8x1xf32> to vector<8x8xf32>
    %23 = arith.subf %19, %22 : vector<8x8xf32>
    %24 = math.exp %23 : vector<8x8xf32>
    %cst_15 = arith.constant dense<0.000000e+00> : vector<8xf32>
    %25 = vector.multi_reduction <add>, %24, %cst_15 [1] : vector<8x8xf32> to vector<8xf32>
    %26 = vector.shape_cast %25 : vector<8xf32> to vector<8x1xf32>
    %27 = tpu.reciprocal %26 {approx = true} : vector<8x1xf32> -> vector<8x1xf32>
    %28 = vector.broadcast %27 : vector<8x1xf32> to vector<8x8xf32>
    %29 = arith.mulf %24, %28 : vector<8x8xf32>
    %30 = arith.truncf %29 : vector<8x8xf32> to vector<8x8xbf16>
    %c0_16 = arith.constant 0 : index
    %c0_17 = arith.constant 0 : index
    %c0_18 = arith.constant 0 : index
    %c0_19 = arith.constant 0 : index
    %31 = vector.load %arg22[%c0_16, %c0_17, %c0_18, %c0_19] : memref<1x4x8x8xbf16, #tpu.memory_space<vmem>>, vector<1x1x8x8xbf16>
    %32 = vector.shape_cast %31 : vector<1x1x8x8xbf16> to vector<8x8xbf16>
    %33 = vector.shape_cast %30 : vector<8x8xbf16> to vector<1x1x8x8xbf16>
    tpu.vector_store %arg22[%c0_16, %c0_17, %c0_18, %c0_19], %33 {strides = array<i32>} : memref<1x4x8x8xbf16, #tpu.memory_space<vmem>>, vector<1x1x8x8xbf16>,
    %34 = arith.truncf %29 : vector<8x8xf32> to vector<8x8xbf16>
    %35 = vector.extract_strided_slice %15 {offsets = [0, 0], sizes = [8, 8], strides = [1, 1]} : vector<8x32xbf16> to vector<8x8xbf16>
    %cst_20 = arith.constant dense<0.000000e+00> : vector<8x8xf32>
    %36 = tpu.matmul %34, %35, %cst_20 {dimension_numbers = #tpu.dot_dimension_numbers<[1], [0], [0], [1], [0, 0, 1, 1], [], []>} : vector<8x8xbf16>, vector<8x8xbf16>, vector<8x8xf32> -> vector<8x8xf32>
    %c0_21 = arith.constant 0 : index
    %c0_22 = arith.constant 0 : index
    %37 = vector.load %arg24[%c0_21, %c0_22] : memref<8x32xf32, #tpu.memory_space<vmem>>, vector<8x8xf32>
    tpu.vector_store %arg24[%c0_21, %c0_22], %36 {strides = array<i32>} : memref<8x32xf32, #tpu.memory_space<vmem>>, vector<8x8xf32>,
    %38 = vector.extract_strided_slice %13 {offsets = [0, 8], sizes = [8, 8], strides = [1, 1]} : vector<8x32xbf16> to vector<8x8xbf16>
    %39 = vector.extract_strided_slice %14 {offsets = [0, 8], sizes = [8, 8], strides = [1, 1]} : vector<8x32xbf16> to vector<8x8xbf16>
    %cst_23 = arith.constant dense<0.000000e+00> : vector<8x8xf32>
    %40 = tpu.matmul %38, %39, %cst_23 {dimension_numbers = #tpu.dot_dimension_numbers<[1], [1], [0], [0], [0, 0, 1, 0], [], []>} : vector<8x8xbf16>, vector<8x8xbf16>, vector<8x8xf32> -> vector<8x8xf32>
    %41 = arith.addf %40, %4 : vector<8x8xf32>
    %cst_24 = arith.constant dense<0xFF800000> : vector<8xf32>
    %42 = vector.multi_reduction <maximumf>, %41, %cst_24 [1] : vector<8x8xf32> to vector<8xf32>
    %43 = vector.shape_cast %42 : vector<8xf32> to vector<8x1xf32>
    %44 = vector.broadcast %43 : vector<8x1xf32> to vector<8x8xf32>
    %45 = arith.subf %41, %44 : vector<8x8xf32>
    %46 = math.exp %45 : vector<8x8xf32>
    %cst_25 = arith.constant dense<0.000000e+00> : vector<8xf32>
    %47 = vector.multi_reduction <add>, %46, %cst_25 [1] : vector<8x8xf32> to vector<8xf32>
    %48 = vector.shape_cast %47 : vector<8xf32> to vector<8x1xf32>
    %49 = tpu.reciprocal %48 {approx = true} : vector<8x1xf32> -> vector<8x1xf32>
    %50 = vector.broadcast %49 : vector<8x1xf32> to vector<8x8xf32>
    %51 = arith.mulf %46, %50 : vector<8x8xf32>
    %52 = arith.truncf %51 : vector<8x8xf32> to vector<8x8xbf16>
    %c0_26 = arith.constant 0 : index
    %c1 = arith.constant 1 : index
    %c0_27 = arith.constant 0 : index
    %c0_28 = arith.constant 0 : index
    %53 = vector.load %arg22[%c0_26, %c1, %c0_27, %c0_28] : memref<1x4x8x8xbf16, #tpu.memory_space<vmem>>, vector<1x1x8x8xbf16>
    %54 = vector.shape_cast %53 : vector<1x1x8x8xbf16> to vector<8x8xbf16>
    %55 = vector.shape_cast %52 : vector<8x8xbf16> to vector<1x1x8x8xbf16>
    tpu.vector_store %arg22[%c0_26, %c1, %c0_27, %c0_28], %55 {strides = array<i32>} : memref<1x4x8x8xbf16, #tpu.memory_space<vmem>>, vector<1x1x8x8xbf16>,
    %56 = arith.truncf %51 : vector<8x8xf32> to vector<8x8xbf16>
    %57 = vector.extract_strided_slice %15 {offsets = [0, 8], sizes = [8, 8], strides = [1, 1]} : vector<8x32xbf16> to vector<8x8xbf16>
    %cst_29 = arith.constant dense<0.000000e+00> : vector<8x8xf32>
    %58 = tpu.matmul %56, %57, %cst_29 {dimension_numbers = #tpu.dot_dimension_numbers<[1], [0], [0], [1], [0, 0, 1, 1], [], []>} : vector<8x8xbf16>, vector<8x8xbf16>, vector<8x8xf32> -> vector<8x8xf32>
    %c0_30 = arith.constant 0 : index
    %c8 = arith.constant 8 : index
    %59 = vector.load %arg24[%c0_30, %c8] : memref<8x32xf32, #tpu.memory_space<vmem>>, vector<8x8xf32>
    tpu.vector_store %arg24[%c0_30, %c8], %58 {strides = array<i32>} : memref<8x32xf32, #tpu.memory_space<vmem>>, vector<8x8xf32>,
    %60 = vector.extract_strided_slice %13 {offsets = [0, 16], sizes = [8, 8], strides = [1, 1]} : vector<8x32xbf16> to vector<8x8xbf16>
    %61 = vector.extract_strided_slice %14 {offsets = [0, 16], sizes = [8, 8], strides = [1, 1]} : vector<8x32xbf16> to vector<8x8xbf16>
    %cst_31 = arith.constant dense<0.000000e+00> : vector<8x8xf32>
    %62 = tpu.matmul %60, %61, %cst_31 {dimension_numbers = #tpu.dot_dimension_numbers<[1], [1], [0], [0], [0, 0, 1, 0], [], []>} : vector<8x8xbf16>, vector<8x8xbf16>, vector<8x8xf32> -> vector<8x8xf32>
    %63 = arith.addf %62, %4 : vector<8x8xf32>
    %cst_32 = arith.constant dense<0xFF800000> : vector<8xf32>
    %64 = vector.multi_reduction <maximumf>, %63, %cst_32 [1] : vector<8x8xf32> to vector<8xf32>
    %65 = vector.shape_cast %64 : vector<8xf32> to vector<8x1xf32>
    %66 = vector.broadcast %65 : vector<8x1xf32> to vector<8x8xf32>
    %67 = arith.subf %63, %66 : vector<8x8xf32>
    %68 = math.exp %67 : vector<8x8xf32>
    %cst_33 = arith.constant dense<0.000000e+00> : vector<8xf32>
    %69 = vector.multi_reduction <add>, %68, %cst_33 [1] : vector<8x8xf32> to vector<8xf32>
    %70 = vector.shape_cast %69 : vector<8xf32> to vector<8x1xf32>
    %71 = tpu.reciprocal %70 {approx = true} : vector<8x1xf32> -> vector<8x1xf32>
    %72 = vector.broadcast %71 : vector<8x1xf32> to vector<8x8xf32>
    %73 = arith.mulf %68, %72 : vector<8x8xf32>
    %74 = arith.truncf %73 : vector<8x8xf32> to vector<8x8xbf16>
    %c0_34 = arith.constant 0 : index
    %c2 = arith.constant 2 : index
    %c0_35 = arith.constant 0 : index
    %c0_36 = arith.constant 0 : index
    %75 = vector.load %arg22[%c0_34, %c2, %c0_35, %c0_36] : memref<1x4x8x8xbf16, #tpu.memory_space<vmem>>, vector<1x1x8x8xbf16>
    %76 = vector.shape_cast %75 : vector<1x1x8x8xbf16> to vector<8x8xbf16>
    %77 = vector.shape_cast %74 : vector<8x8xbf16> to vector<1x1x8x8xbf16>
    tpu.vector_store %arg22[%c0_34, %c2, %c0_35, %c0_36], %77 {strides = array<i32>} : memref<1x4x8x8xbf16, #tpu.memory_space<vmem>>, vector<1x1x8x8xbf16>,
    %78 = arith.truncf %73 : vector<8x8xf32> to vector<8x8xbf16>
    %79 = vector.extract_strided_slice %15 {offsets = [0, 16], sizes = [8, 8], strides = [1, 1]} : vector<8x32xbf16> to vector<8x8xbf16>
    %cst_37 = arith.constant dense<0.000000e+00> : vector<8x8xf32>
    %80 = tpu.matmul %78, %79, %cst_37 {dimension_numbers = #tpu.dot_dimension_numbers<[1], [0], [0], [1], [0, 0, 1, 1], [], []>} : vector<8x8xbf16>, vector<8x8xbf16>, vector<8x8xf32> -> vector<8x8xf32>
    %c0_38 = arith.constant 0 : index
    %c16 = arith.constant 16 : index
    %81 = vector.load %arg24[%c0_38, %c16] : memref<8x32xf32, #tpu.memory_space<vmem>>, vector<8x8xf32>
    tpu.vector_store %arg24[%c0_38, %c16], %80 {strides = array<i32>} : memref<8x32xf32, #tpu.memory_space<vmem>>, vector<8x8xf32>,
    %82 = vector.extract_strided_slice %13 {offsets = [0, 24], sizes = [8, 8], strides = [1, 1]} : vector<8x32xbf16> to vector<8x8xbf16>
    %83 = vector.extract_strided_slice %14 {offsets = [0, 24], sizes = [8, 8], strides = [1, 1]} : vector<8x32xbf16> to vector<8x8xbf16>
    %cst_39 = arith.constant dense<0.000000e+00> : vector<8x8xf32>
    %84 = tpu.matmul %82, %83, %cst_39 {dimension_numbers = #tpu.dot_dimension_numbers<[1], [1], [0], [0], [0, 0, 1, 0], [], []>} : vector<8x8xbf16>, vector<8x8xbf16>, vector<8x8xf32> -> vector<8x8xf32>
    %85 = arith.addf %84, %4 : vector<8x8xf32>
    %cst_40 = arith.constant dense<0xFF800000> : vector<8xf32>
    %86 = vector.multi_reduction <maximumf>, %85, %cst_40 [1] : vector<8x8xf32> to vector<8xf32>
    %87 = vector.shape_cast %86 : vector<8xf32> to vector<8x1xf32>
    %88 = vector.broadcast %87 : vector<8x1xf32> to vector<8x8xf32>
    %89 = arith.subf %85, %88 : vector<8x8xf32>
    %90 = math.exp %89 : vector<8x8xf32>
    %cst_41 = arith.constant dense<0.000000e+00> : vector<8xf32>
    %91 = vector.multi_reduction <add>, %90, %cst_41 [1] : vector<8x8xf32> to vector<8xf32>
    %92 = vector.shape_cast %91 : vector<8xf32> to vector<8x1xf32>
    %93 = tpu.reciprocal %92 {approx = true} : vector<8x1xf32> -> vector<8x1xf32>
    %94 = vector.broadcast %93 : vector<8x1xf32> to vector<8x8xf32>
    %95 = arith.mulf %90, %94 : vector<8x8xf32>
    %96 = arith.truncf %95 : vector<8x8xf32> to vector<8x8xbf16>
    %c0_42 = arith.constant 0 : index
    %c3 = arith.constant 3 : index
    %c0_43 = arith.constant 0 : index
    %c0_44 = arith.constant 0 : index
    %97 = vector.load %arg22[%c0_42, %c3, %c0_43, %c0_44] : memref<1x4x8x8xbf16, #tpu.memory_space<vmem>>, vector<1x1x8x8xbf16>
    %98 = vector.shape_cast %97 : vector<1x1x8x8xbf16> to vector<8x8xbf16>
    %99 = vector.shape_cast %96 : vector<8x8xbf16> to vector<1x1x8x8xbf16>
    tpu.vector_store %arg22[%c0_42, %c3, %c0_43, %c0_44], %99 {strides = array<i32>} : memref<1x4x8x8xbf16, #tpu.memory_space<vmem>>, vector<1x1x8x8xbf16>,
    %100 = arith.truncf %95 : vector<8x8xf32> to vector<8x8xbf16>
    %101 = vector.extract_strided_slice %15 {offsets = [0, 24], sizes = [8, 8], strides = [1, 1]} : vector<8x32xbf16> to vector<8x8xbf16>
    %cst_45 = arith.constant dense<0.000000e+00> : vector<8x8xf32>
    %102 = tpu.matmul %100, %101, %cst_45 {dimension_numbers = #tpu.dot_dimension_numbers<[1], [0], [0], [1], [0, 0, 1, 1], [], []>} : vector<8x8xbf16>, vector<8x8xbf16>, vector<8x8xf32> -> vector<8x8xf32>
    %c0_46 = arith.constant 0 : index
    %c24 = arith.constant 24 : index
    %103 = vector.load %arg24[%c0_46, %c24] : memref<8x32xf32, #tpu.memory_space<vmem>>, vector<8x8xf32>
    tpu.vector_store %arg24[%c0_46, %c24], %102 {strides = array<i32>} : memref<8x32xf32, #tpu.memory_space<vmem>>, vector<8x8xf32>,
    %c0_47 = arith.constant 0 : index
    %c0_48 = arith.constant 0 : index
    %104 = vector.load %arg24[%c0_47, %c0_48] : memref<8x32xf32, #tpu.memory_space<vmem>>, vector<8x32xf32>
    %105 = arith.truncf %104 : vector<8x32xf32> to vector<8x32xbf16>
    %c0_49 = arith.constant 0 : index
    %c0_50 = arith.constant 0 : index
    %106 = vector.load %arg7[%c0_49, %c0_50] : memref<32x32xbf16, #tpu.memory_space<vmem>>, vector<32x32xbf16>
    %cst_51 = arith.constant dense<0.000000e+00> : vector<8x32xf32>
    %107 = tpu.matmul %105, %106, %cst_51 {dimension_numbers = #tpu.dot_dimension_numbers<[1], [0], [0], [1], [0, 0, 1, 1], [], []>} : vector<8x32xbf16>, vector<32x32xbf16>, vector<8x32xf32> -> vector<8x32xf32>
    %c0_52 = arith.constant 0 : index
    %c0_53 = arith.constant 0 : index
    %108 = vector.load %arg8[%c0_52, %c0_53] : memref<1x32xf32, #tpu.memory_space<vmem>>, vector<1x32xf32>
    %109 = vector.broadcast %108 : vector<1x32xf32> to vector<8x32xf32>
    %110 = arith.addf %107, %109 : vector<8x32xf32>
    %111 = arith.addf %110, %1 : vector<8x32xf32>
    %c0_54 = arith.constant 0 : index
    %c0_55 = arith.constant 0 : index
    %112 = vector.load %arg19[%c0_54, %c0_55] : memref<3x32xf32, #tpu.memory_space<vmem>>, vector<1x32xf32>
    %c0_56 = arith.constant 0 : index
    %c0_57 = arith.constant 0 : index
    %113 = vector.load %arg20[%c0_56, %c0_57] : memref<3x32xf32, #tpu.memory_space<vmem>>, vector<1x32xf32>
    %cst_58 = arith.constant dense<0.000000e+00> : vector<8xf32>
    %114 = vector.multi_reduction <add>, %111, %cst_58 [1] : vector<8x32xf32> to vector<8xf32>
    %115 = vector.shape_cast %114 : vector<8xf32> to vector<8x1xf32>
    %cst_59 = arith.constant 3.200000e+01 : f32
    %116 = vector.broadcast %cst_59 : f32 to vector<8x1xf32>
    %117 = arith.divf %115, %116 : vector<8x1xf32>
    %118 = vector.broadcast %117 : vector<8x1xf32> to vector<8x32xf32>
    %119 = arith.subf %111, %118 : vector<8x32xf32>
    %120 = arith.mulf %119, %119 : vector<8x32xf32>
    %cst_60 = arith.constant dense<0.000000e+00> : vector<8xf32>
    %121 = vector.multi_reduction <add>, %120, %cst_60 [1] : vector<8x32xf32> to vector<8xf32>
    %122 = vector.shape_cast %121 : vector<8xf32> to vector<8x1xf32>
    %cst_61 = arith.constant 3.200000e+01 : f32
    %123 = vector.broadcast %cst_61 : f32 to vector<8x1xf32>
    %124 = arith.divf %122, %123 : vector<8x1xf32>
    %125 = vector.broadcast %117 : vector<8x1xf32> to vector<8x32xf32>
    %126 = arith.subf %111, %125 : vector<8x32xf32>
    %cst_62 = arith.constant 9.99999997E-7 : f32
    %127 = vector.broadcast %cst_62 : f32 to vector<8x1xf32>
    %128 = arith.addf %124, %127 : vector<8x1xf32>
    %129 = math.rsqrt %128 : vector<8x1xf32>
    %130 = vector.broadcast %129 : vector<8x1xf32> to vector<8x32xf32>
    %131 = arith.mulf %126, %130 : vector<8x32xf32>
    %132 = vector.broadcast %112 : vector<1x32xf32> to vector<8x32xf32>
    %133 = arith.mulf %131, %132 : vector<8x32xf32>
    %134 = vector.broadcast %113 : vector<1x32xf32> to vector<8x32xf32>
    %135 = arith.addf %133, %134 : vector<8x32xf32>
    %136 = arith.truncf %3 : vector<8x32xf32> to vector<8x32xbf16>
    %c0_63 = arith.constant 0 : index
    %c0_64 = arith.constant 0 : index
    %137 = vector.load %arg11[%c0_63, %c0_64] : memref<32x64xbf16, #tpu.memory_space<vmem>>, vector<32x64xbf16>
    %cst_65 = arith.constant dense<0.000000e+00> : vector<8x64xf32>
    %138 = tpu.matmul %136, %137, %cst_65 {dimension_numbers = #tpu.dot_dimension_numbers<[1], [0], [0], [1], [0, 0, 1, 1], [], []>} : vector<8x32xbf16>, vector<32x64xbf16>, vector<8x64xf32> -> vector<8x64xf32>
    %c0_66 = arith.constant 0 : index
    %c0_67 = arith.constant 0 : index
    %139 = vector.load %arg12[%c0_66, %c0_67] : memref<1x64xf32, #tpu.memory_space<vmem>>, vector<1x64xf32>
    %140 = vector.broadcast %139 : vector<1x64xf32> to vector<8x64xf32>
    %141 = arith.addf %138, %140 : vector<8x64xf32>
    %142 = arith.truncf %135 : vector<8x32xf32> to vector<8x32xbf16>
    %c0_68 = arith.constant 0 : index
    %c0_69 = arith.constant 0 : index
    %143 = vector.load %arg9[%c0_68, %c0_69] : memref<32x32xbf16, #tpu.memory_space<vmem>>, vector<32x32xbf16>
    %cst_70 = arith.constant dense<0.000000e+00> : vector<8x32xf32>
    %144 = tpu.matmul %142, %143, %cst_70 {dimension_numbers = #tpu.dot_dimension_numbers<[1], [0], [0], [1], [0, 0, 1, 1], [], []>} : vector<8x32xbf16>, vector<32x32xbf16>, vector<8x32xf32> -> vector<8x32xf32>
    %c0_71 = arith.constant 0 : index
    %c0_72 = arith.constant 0 : index
    %145 = vector.load %arg10[%c0_71, %c0_72] : memref<1x32xf32, #tpu.memory_space<vmem>>, vector<1x32xf32>
    %146 = vector.broadcast %145 : vector<1x32xf32> to vector<8x32xf32>
    %147 = arith.addf %144, %146 : vector<8x32xf32>
    %148 = arith.truncf %141 : vector<8x64xf32> to vector<8x64xbf16>
    %149 = arith.truncf %147 : vector<8x32xf32> to vector<8x32xbf16>
    %150 = vector.extract_strided_slice %148 {offsets = [0, 0], sizes = [8, 32], strides = [1, 1]} : vector<8x64xbf16> to vector<8x32xbf16>
    %151 = vector.extract_strided_slice %148 {offsets = [0, 32], sizes = [8, 32], strides = [1, 1]} : vector<8x64xbf16> to vector<8x32xbf16>
    %152 = vector.extract_strided_slice %149 {offsets = [0, 0], sizes = [8, 8], strides = [1, 1]} : vector<8x32xbf16> to vector<8x8xbf16>
    %153 = vector.extract_strided_slice %150 {offsets = [0, 0], sizes = [8, 8], strides = [1, 1]} : vector<8x32xbf16> to vector<8x8xbf16>
    %cst_73 = arith.constant dense<0.000000e+00> : vector<8x8xf32>
    %154 = tpu.matmul %152, %153, %cst_73 {dimension_numbers = #tpu.dot_dimension_numbers<[1], [1], [0], [0], [0, 0, 1, 0], [], []>} : vector<8x8xbf16>, vector<8x8xbf16>, vector<8x8xf32> -> vector<8x8xf32>
    %155 = arith.addf %154, %5 : vector<8x8xf32>
    %cst_74 = arith.constant dense<0xFF800000> : vector<8xf32>
    %156 = vector.multi_reduction <maximumf>, %155, %cst_74 [1] : vector<8x8xf32> to vector<8xf32>
    %157 = vector.shape_cast %156 : vector<8xf32> to vector<8x1xf32>
    %158 = vector.broadcast %157 : vector<8x1xf32> to vector<8x8xf32>
    %159 = arith.subf %155, %158 : vector<8x8xf32>
    %160 = math.exp %159 : vector<8x8xf32>
    %cst_75 = arith.constant dense<0.000000e+00> : vector<8xf32>
    %161 = vector.multi_reduction <add>, %160, %cst_75 [1] : vector<8x8xf32> to vector<8xf32>
    %162 = vector.shape_cast %161 : vector<8xf32> to vector<8x1xf32>
    %163 = tpu.reciprocal %162 {approx = true} : vector<8x1xf32> -> vector<8x1xf32>
    %164 = vector.broadcast %163 : vector<8x1xf32> to vector<8x8xf32>
    %165 = arith.mulf %160, %164 : vector<8x8xf32>
    %166 = arith.truncf %165 : vector<8x8xf32> to vector<8x8xbf16>
    %c0_76 = arith.constant 0 : index
    %c0_77 = arith.constant 0 : index
    %c0_78 = arith.constant 0 : index
    %c0_79 = arith.constant 0 : index
    %167 = vector.load %arg23[%c0_76, %c0_77, %c0_78, %c0_79] : memref<1x4x8x8xbf16, #tpu.memory_space<vmem>>, vector<1x1x8x8xbf16>
    %168 = vector.shape_cast %167 : vector<1x1x8x8xbf16> to vector<8x8xbf16>
    %169 = vector.shape_cast %166 : vector<8x8xbf16> to vector<1x1x8x8xbf16>
    tpu.vector_store %arg23[%c0_76, %c0_77, %c0_78, %c0_79], %169 {strides = array<i32>} : memref<1x4x8x8xbf16, #tpu.memory_space<vmem>>, vector<1x1x8x8xbf16>,
    %170 = arith.truncf %165 : vector<8x8xf32> to vector<8x8xbf16>
    %171 = vector.extract_strided_slice %151 {offsets = [0, 0], sizes = [8, 8], strides = [1, 1]} : vector<8x32xbf16> to vector<8x8xbf16>
    %cst_80 = arith.constant dense<0.000000e+00> : vector<8x8xf32>
    %172 = tpu.matmul %170, %171, %cst_80 {dimension_numbers = #tpu.dot_dimension_numbers<[1], [0], [0], [1], [0, 0, 1, 1], [], []>} : vector<8x8xbf16>, vector<8x8xbf16>, vector<8x8xf32> -> vector<8x8xf32>
    %c0_81 = arith.constant 0 : index
    %c0_82 = arith.constant 0 : index
    %173 = vector.load %arg24[%c0_81, %c0_82] : memref<8x32xf32, #tpu.memory_space<vmem>>, vector<8x8xf32>
    tpu.vector_store %arg24[%c0_81, %c0_82], %172 {strides = array<i32>} : memref<8x32xf32, #tpu.memory_space<vmem>>, vector<8x8xf32>,
    %174 = vector.extract_strided_slice %149 {offsets = [0, 8], sizes = [8, 8], strides = [1, 1]} : vector<8x32xbf16> to vector<8x8xbf16>
    %175 = vector.extract_strided_slice %150 {offsets = [0, 8], sizes = [8, 8], strides = [1, 1]} : vector<8x32xbf16> to vector<8x8xbf16>
    %cst_83 = arith.constant dense<0.000000e+00> : vector<8x8xf32>
    %176 = tpu.matmul %174, %175, %cst_83 {dimension_numbers = #tpu.dot_dimension_numbers<[1], [1], [0], [0], [0, 0, 1, 0], [], []>} : vector<8x8xbf16>, vector<8x8xbf16>, vector<8x8xf32> -> vector<8x8xf32>
    %177 = arith.addf %176, %5 : vector<8x8xf32>
    %cst_84 = arith.constant dense<0xFF800000> : vector<8xf32>
    %178 = vector.multi_reduction <maximumf>, %177, %cst_84 [1] : vector<8x8xf32> to vector<8xf32>
    %179 = vector.shape_cast %178 : vector<8xf32> to vector<8x1xf32>
    %180 = vector.broadcast %179 : vector<8x1xf32> to vector<8x8xf32>
    %181 = arith.subf %177, %180 : vector<8x8xf32>
    %182 = math.exp %181 : vector<8x8xf32>
    %cst_85 = arith.constant dense<0.000000e+00> : vector<8xf32>
    %183 = vector.multi_reduction <add>, %182, %cst_85 [1] : vector<8x8xf32> to vector<8xf32>
    %184 = vector.shape_cast %183 : vector<8xf32> to vector<8x1xf32>
    %185 = tpu.reciprocal %184 {approx = true} : vector<8x1xf32> -> vector<8x1xf32>
    %186 = vector.broadcast %185 : vector<8x1xf32> to vector<8x8xf32>
    %187 = arith.mulf %182, %186 : vector<8x8xf32>
    %188 = arith.truncf %187 : vector<8x8xf32> to vector<8x8xbf16>
    %c0_86 = arith.constant 0 : index
    %c1_87 = arith.constant 1 : index
    %c0_88 = arith.constant 0 : index
    %c0_89 = arith.constant 0 : index
    %189 = vector.load %arg23[%c0_86, %c1_87, %c0_88, %c0_89] : memref<1x4x8x8xbf16, #tpu.memory_space<vmem>>, vector<1x1x8x8xbf16>
    %190 = vector.shape_cast %189 : vector<1x1x8x8xbf16> to vector<8x8xbf16>
    %191 = vector.shape_cast %188 : vector<8x8xbf16> to vector<1x1x8x8xbf16>
    tpu.vector_store %arg23[%c0_86, %c1_87, %c0_88, %c0_89], %191 {strides = array<i32>} : memref<1x4x8x8xbf16, #tpu.memory_space<vmem>>, vector<1x1x8x8xbf16>,
    %192 = arith.truncf %187 : vector<8x8xf32> to vector<8x8xbf16>
    %193 = vector.extract_strided_slice %151 {offsets = [0, 8], sizes = [8, 8], strides = [1, 1]} : vector<8x32xbf16> to vector<8x8xbf16>
    %cst_90 = arith.constant dense<0.000000e+00> : vector<8x8xf32>
    %194 = tpu.matmul %192, %193, %cst_90 {dimension_numbers = #tpu.dot_dimension_numbers<[1], [0], [0], [1], [0, 0, 1, 1], [], []>} : vector<8x8xbf16>, vector<8x8xbf16>, vector<8x8xf32> -> vector<8x8xf32>
    %c0_91 = arith.constant 0 : index
    %c8_92 = arith.constant 8 : index
    %195 = vector.load %arg24[%c0_91, %c8_92] : memref<8x32xf32, #tpu.memory_space<vmem>>, vector<8x8xf32>
    tpu.vector_store %arg24[%c0_91, %c8_92], %194 {strides = array<i32>} : memref<8x32xf32, #tpu.memory_space<vmem>>, vector<8x8xf32>,
    %196 = vector.extract_strided_slice %149 {offsets = [0, 16], sizes = [8, 8], strides = [1, 1]} : vector<8x32xbf16> to vector<8x8xbf16>
    %197 = vector.extract_strided_slice %150 {offsets = [0, 16], sizes = [8, 8], strides = [1, 1]} : vector<8x32xbf16> to vector<8x8xbf16>
    %cst_93 = arith.constant dense<0.000000e+00> : vector<8x8xf32>
    %198 = tpu.matmul %196, %197, %cst_93 {dimension_numbers = #tpu.dot_dimension_numbers<[1], [1], [0], [0], [0, 0, 1, 0], [], []>} : vector<8x8xbf16>, vector<8x8xbf16>, vector<8x8xf32> -> vector<8x8xf32>
    %199 = arith.addf %198, %5 : vector<8x8xf32>
    %cst_94 = arith.constant dense<0xFF800000> : vector<8xf32>
    %200 = vector.multi_reduction <maximumf>, %199, %cst_94 [1] : vector<8x8xf32> to vector<8xf32>
    %201 = vector.shape_cast %200 : vector<8xf32> to vector<8x1xf32>
    %202 = vector.broadcast %201 : vector<8x1xf32> to vector<8x8xf32>
    %203 = arith.subf %199, %202 : vector<8x8xf32>
    %204 = math.exp %203 : vector<8x8xf32>
    %cst_95 = arith.constant dense<0.000000e+00> : vector<8xf32>
    %205 = vector.multi_reduction <add>, %204, %cst_95 [1] : vector<8x8xf32> to vector<8xf32>
    %206 = vector.shape_cast %205 : vector<8xf32> to vector<8x1xf32>
    %207 = tpu.reciprocal %206 {approx = true} : vector<8x1xf32> -> vector<8x1xf32>
    %208 = vector.broadcast %207 : vector<8x1xf32> to vector<8x8xf32>
    %209 = arith.mulf %204, %208 : vector<8x8xf32>
    %210 = arith.truncf %209 : vector<8x8xf32> to vector<8x8xbf16>
    %c0_96 = arith.constant 0 : index
    %c2_97 = arith.constant 2 : index
    %c0_98 = arith.constant 0 : index
    %c0_99 = arith.constant 0 : index
    %211 = vector.load %arg23[%c0_96, %c2_97, %c0_98, %c0_99] : memref<1x4x8x8xbf16, #tpu.memory_space<vmem>>, vector<1x1x8x8xbf16>
    %212 = vector.shape_cast %211 : vector<1x1x8x8xbf16> to vector<8x8xbf16>
    %213 = vector.shape_cast %210 : vector<8x8xbf16> to vector<1x1x8x8xbf16>
    tpu.vector_store %arg23[%c0_96, %c2_97, %c0_98, %c0_99], %213 {strides = array<i32>} : memref<1x4x8x8xbf16, #tpu.memory_space<vmem>>, vector<1x1x8x8xbf16>,
    %214 = arith.truncf %209 : vector<8x8xf32> to vector<8x8xbf16>
    %215 = vector.extract_strided_slice %151 {offsets = [0, 16], sizes = [8, 8], strides = [1, 1]} : vector<8x32xbf16> to vector<8x8xbf16>
    %cst_100 = arith.constant dense<0.000000e+00> : vector<8x8xf32>
    %216 = tpu.matmul %214, %215, %cst_100 {dimension_numbers = #tpu.dot_dimension_numbers<[1], [0], [0], [1], [0, 0, 1, 1], [], []>} : vector<8x8xbf16>, vector<8x8xbf16>, vector<8x8xf32> -> vector<8x8xf32>
    %c0_101 = arith.constant 0 : index
    %c16_102 = arith.constant 16 : index
    %217 = vector.load %arg24[%c0_101, %c16_102] : memref<8x32xf32, #tpu.memory_space<vmem>>, vector<8x8xf32>
    tpu.vector_store %arg24[%c0_101, %c16_102], %216 {strides = array<i32>} : memref<8x32xf32, #tpu.memory_space<vmem>>, vector<8x8xf32>,
    %218 = vector.extract_strided_slice %149 {offsets = [0, 24], sizes = [8, 8], strides = [1, 1]} : vector<8x32xbf16> to vector<8x8xbf16>
    %219 = vector.extract_strided_slice %150 {offsets = [0, 24], sizes = [8, 8], strides = [1, 1]} : vector<8x32xbf16> to vector<8x8xbf16>
    %cst_103 = arith.constant dense<0.000000e+00> : vector<8x8xf32>
    %220 = tpu.matmul %218, %219, %cst_103 {dimension_numbers = #tpu.dot_dimension_numbers<[1], [1], [0], [0], [0, 0, 1, 0], [], []>} : vector<8x8xbf16>, vector<8x8xbf16>, vector<8x8xf32> -> vector<8x8xf32>
    %221 = arith.addf %220, %5 : vector<8x8xf32>
    %cst_104 = arith.constant dense<0xFF800000> : vector<8xf32>
    %222 = vector.multi_reduction <maximumf>, %221, %cst_104 [1] : vector<8x8xf32> to vector<8xf32>
    %223 = vector.shape_cast %222 : vector<8xf32> to vector<8x1xf32>
    %224 = vector.broadcast %223 : vector<8x1xf32> to vector<8x8xf32>
    %225 = arith.subf %221, %224 : vector<8x8xf32>
    %226 = math.exp %225 : vector<8x8xf32>
    %cst_105 = arith.constant dense<0.000000e+00> : vector<8xf32>
    %227 = vector.multi_reduction <add>, %226, %cst_105 [1] : vector<8x8xf32> to vector<8xf32>
    %228 = vector.shape_cast %227 : vector<8xf32> to vector<8x1xf32>
    %229 = tpu.reciprocal %228 {approx = true} : vector<8x1xf32> -> vector<8x1xf32>
    %230 = vector.broadcast %229 : vector<8x1xf32> to vector<8x8xf32>
    %231 = arith.mulf %226, %230 : vector<8x8xf32>
    %232 = arith.truncf %231 : vector<8x8xf32> to vector<8x8xbf16>
    %c0_106 = arith.constant 0 : index
    %c3_107 = arith.constant 3 : index
    %c0_108 = arith.constant 0 : index
    %c0_109 = arith.constant 0 : index
    %233 = vector.load %arg23[%c0_106, %c3_107, %c0_108, %c0_109] : memref<1x4x8x8xbf16, #tpu.memory_space<vmem>>, vector<1x1x8x8xbf16>
    %234 = vector.shape_cast %233 : vector<1x1x8x8xbf16> to vector<8x8xbf16>
    %235 = vector.shape_cast %232 : vector<8x8xbf16> to vector<1x1x8x8xbf16>
    tpu.vector_store %arg23[%c0_106, %c3_107, %c0_108, %c0_109], %235 {strides = array<i32>} : memref<1x4x8x8xbf16, #tpu.memory_space<vmem>>, vector<1x1x8x8xbf16>,
    %236 = arith.truncf %231 : vector<8x8xf32> to vector<8x8xbf16>
    %237 = vector.extract_strided_slice %151 {offsets = [0, 24], sizes = [8, 8], strides = [1, 1]} : vector<8x32xbf16> to vector<8x8xbf16>
    %cst_110 = arith.constant dense<0.000000e+00> : vector<8x8xf32>
    %238 = tpu.matmul %236, %237, %cst_110 {dimension_numbers = #tpu.dot_dimension_numbers<[1], [0], [0], [1], [0, 0, 1, 1], [], []>} : vector<8x8xbf16>, vector<8x8xbf16>, vector<8x8xf32> -> vector<8x8xf32>
    %c0_111 = arith.constant 0 : index
    %c24_112 = arith.constant 24 : index
    %239 = vector.load %arg24[%c0_111, %c24_112] : memref<8x32xf32, #tpu.memory_space<vmem>>, vector<8x8xf32>
    tpu.vector_store %arg24[%c0_111, %c24_112], %238 {strides = array<i32>} : memref<8x32xf32, #tpu.memory_space<vmem>>, vector<8x8xf32>,
    %c0_113 = arith.constant 0 : index
    %c0_114 = arith.constant 0 : index
    %240 = vector.load %arg24[%c0_113, %c0_114] : memref<8x32xf32, #tpu.memory_space<vmem>>, vector<8x32xf32>
    %241 = arith.truncf %240 : vector<8x32xf32> to vector<8x32xbf16>
    %c0_115 = arith.constant 0 : index
    %c0_116 = arith.constant 0 : index
    %242 = vector.load %arg13[%c0_115, %c0_116] : memref<32x32xbf16, #tpu.memory_space<vmem>>, vector<32x32xbf16>
    %cst_117 = arith.constant dense<0.000000e+00> : vector<8x32xf32>
    %243 = tpu.matmul %241, %242, %cst_117 {dimension_numbers = #tpu.dot_dimension_numbers<[1], [0], [0], [1], [0, 0, 1, 1], [], []>} : vector<8x32xbf16>, vector<32x32xbf16>, vector<8x32xf32> -> vector<8x32xf32>
    %c0_118 = arith.constant 0 : index
    %c0_119 = arith.constant 0 : index
    %244 = vector.load %arg14[%c0_118, %c0_119] : memref<1x32xf32, #tpu.memory_space<vmem>>, vector<1x32xf32>
    %245 = vector.broadcast %244 : vector<1x32xf32> to vector<8x32xf32>
    %246 = arith.addf %243, %245 : vector<8x32xf32>
    %247 = arith.addf %246, %135 : vector<8x32xf32>
    %c1_120 = arith.constant 1 : index
    %c0_121 = arith.constant 0 : index
    %248 = vector.load %arg19[%c1_120, %c0_121] : memref<3x32xf32, #tpu.memory_space<vmem>>, vector<1x32xf32>
    %c1_122 = arith.constant 1 : index
    %c0_123 = arith.constant 0 : index
    %249 = vector.load %arg20[%c1_122, %c0_123] : memref<3x32xf32, #tpu.memory_space<vmem>>, vector<1x32xf32>
    %cst_124 = arith.constant dense<0.000000e+00> : vector<8xf32>
    %250 = vector.multi_reduction <add>, %247, %cst_124 [1] : vector<8x32xf32> to vector<8xf32>
    %251 = vector.shape_cast %250 : vector<8xf32> to vector<8x1xf32>
    %cst_125 = arith.constant 3.200000e+01 : f32
    %252 = vector.broadcast %cst_125 : f32 to vector<8x1xf32>
    %253 = arith.divf %251, %252 : vector<8x1xf32>
    %254 = vector.broadcast %253 : vector<8x1xf32> to vector<8x32xf32>
    %255 = arith.subf %247, %254 : vector<8x32xf32>
    %256 = arith.mulf %255, %255 : vector<8x32xf32>
    %cst_126 = arith.constant dense<0.000000e+00> : vector<8xf32>
    %257 = vector.multi_reduction <add>, %256, %cst_126 [1] : vector<8x32xf32> to vector<8xf32>
    %258 = vector.shape_cast %257 : vector<8xf32> to vector<8x1xf32>
    %cst_127 = arith.constant 3.200000e+01 : f32
    %259 = vector.broadcast %cst_127 : f32 to vector<8x1xf32>
    %260 = arith.divf %258, %259 : vector<8x1xf32>
    %261 = vector.broadcast %253 : vector<8x1xf32> to vector<8x32xf32>
    %262 = arith.subf %247, %261 : vector<8x32xf32>
    %cst_128 = arith.constant 9.99999997E-7 : f32
    %263 = vector.broadcast %cst_128 : f32 to vector<8x1xf32>
    %264 = arith.addf %260, %263 : vector<8x1xf32>
    %265 = math.rsqrt %264 : vector<8x1xf32>
    %266 = vector.broadcast %265 : vector<8x1xf32> to vector<8x32xf32>
    %267 = arith.mulf %262, %266 : vector<8x32xf32>
    %268 = vector.broadcast %248 : vector<1x32xf32> to vector<8x32xf32>
    %269 = arith.mulf %267, %268 : vector<8x32xf32>
    %270 = vector.broadcast %249 : vector<1x32xf32> to vector<8x32xf32>
    %271 = arith.addf %269, %270 : vector<8x32xf32>
    %272 = arith.truncf %271 : vector<8x32xf32> to vector<8x32xbf16>
    %c0_129 = arith.constant 0 : index
    %c0_130 = arith.constant 0 : index
    %273 = vector.load %arg15[%c0_129, %c0_130] : memref<32x64xbf16, #tpu.memory_space<vmem>>, vector<32x64xbf16>
    %cst_131 = arith.constant dense<0.000000e+00> : vector<8x64xf32>
    %274 = tpu.matmul %272, %273, %cst_131 {dimension_numbers = #tpu.dot_dimension_numbers<[1], [0], [0], [1], [0, 0, 1, 1], [], []>} : vector<8x32xbf16>, vector<32x64xbf16>, vector<8x64xf32> -> vector<8x64xf32>
    %c0_132 = arith.constant 0 : index
    %c0_133 = arith.constant 0 : index
    %275 = vector.load %arg16[%c0_132, %c0_133] : memref<1x64xf32, #tpu.memory_space<vmem>>, vector<1x64xf32>
    %276 = vector.broadcast %275 : vector<1x64xf32> to vector<8x64xf32>
    %277 = arith.addf %274, %276 : vector<8x64xf32>
    %cst_134 = arith.constant 0.000000e+00 : f32
    %278 = vector.broadcast %cst_134 : f32 to vector<8x64xf32>
    %279 = arith.maximumf %277, %278 : vector<8x64xf32>
    %280 = arith.truncf %279 : vector<8x64xf32> to vector<8x64xbf16>
    %c0_135 = arith.constant 0 : index
    %c0_136 = arith.constant 0 : index
    %281 = vector.load %arg17[%c0_135, %c0_136] : memref<64x32xbf16, #tpu.memory_space<vmem>>, vector<64x32xbf16>
    %cst_137 = arith.constant dense<0.000000e+00> : vector<8x32xf32>
    %282 = tpu.matmul %280, %281, %cst_137 {dimension_numbers = #tpu.dot_dimension_numbers<[1], [0], [0], [1], [0, 0, 1, 1], [], []>} : vector<8x64xbf16>, vector<64x32xbf16>, vector<8x32xf32> -> vector<8x32xf32>
    %c0_138 = arith.constant 0 : index
    %c0_139 = arith.constant 0 : index
    %283 = vector.load %arg18[%c0_138, %c0_139] : memref<1x32xf32, #tpu.memory_space<vmem>>, vector<1x32xf32>
    %284 = vector.broadcast %283 : vector<1x32xf32> to vector<8x32xf32>
    %285 = arith.addf %282, %284 : vector<8x32xf32>
    %286 = arith.addf %271, %285 : vector<8x32xf32>
    %c2_140 = arith.constant 2 : index
    %c0_141 = arith.constant 0 : index
    %287 = vector.load %arg19[%c2_140, %c0_141] : memref<3x32xf32, #tpu.memory_space<vmem>>, vector<1x32xf32>
    %c2_142 = arith.constant 2 : index
    %c0_143 = arith.constant 0 : index
    %288 = vector.load %arg20[%c2_142, %c0_143] : memref<3x32xf32, #tpu.memory_space<vmem>>, vector<1x32xf32>
    %cst_144 = arith.constant dense<0.000000e+00> : vector<8xf32>
    %289 = vector.multi_reduction <add>, %286, %cst_144 [1] : vector<8x32xf32> to vector<8xf32>
    %290 = vector.shape_cast %289 : vector<8xf32> to vector<8x1xf32>
    %cst_145 = arith.constant 3.200000e+01 : f32
    %291 = vector.broadcast %cst_145 : f32 to vector<8x1xf32>
    %292 = arith.divf %290, %291 : vector<8x1xf32>
    %293 = vector.broadcast %292 : vector<8x1xf32> to vector<8x32xf32>
    %294 = arith.subf %286, %293 : vector<8x32xf32>
    %295 = arith.mulf %294, %294 : vector<8x32xf32>
    %cst_146 = arith.constant dense<0.000000e+00> : vector<8xf32>
    %296 = vector.multi_reduction <add>, %295, %cst_146 [1] : vector<8x32xf32> to vector<8xf32>
    %297 = vector.shape_cast %296 : vector<8xf32> to vector<8x1xf32>
    %cst_147 = arith.constant 3.200000e+01 : f32
    %298 = vector.broadcast %cst_147 : f32 to vector<8x1xf32>
    %299 = arith.divf %297, %298 : vector<8x1xf32>
    %300 = vector.broadcast %292 : vector<8x1xf32> to vector<8x32xf32>
    %301 = arith.subf %286, %300 : vector<8x32xf32>
    %cst_148 = arith.constant 9.99999997E-7 : f32
    %302 = vector.broadcast %cst_148 : f32 to vector<8x1xf32>
    %303 = arith.addf %299, %302 : vector<8x1xf32>
    %304 = math.rsqrt %303 : vector<8x1xf32>
    %305 = vector.broadcast %304 : vector<8x1xf32> to vector<8x32xf32>
    %306 = arith.mulf %301, %305 : vector<8x32xf32>
    %307 = vector.broadcast %287 : vector<1x32xf32> to vector<8x32xf32>
    %308 = arith.mulf %306, %307 : vector<8x32xf32>
    %309 = vector.broadcast %288 : vector<1x32xf32> to vector<8x32xf32>
    %310 = arith.addf %308, %309 : vector<8x32xf32>
    %c0_149 = arith.constant 0 : index
    %c0_150 = arith.constant 0 : index
    %c0_151 = arith.constant 0 : index
    %311 = vector.load %arg21[%c0_149, %c0_150, %c0_151] : memref<1x8x32xf32, #tpu.memory_space<vmem>>, vector<1x8x32xf32>
    %312 = vector.shape_cast %311 : vector<1x8x32xf32> to vector<8x32xf32>
    %313 = vector.shape_cast %310 : vector<8x32xf32> to vector<1x8x32xf32>
    tpu.vector_store %arg21[%c0_149, %c0_150, %c0_151], %313 {strides = array<i32>} : memref<1x8x32xf32, #tpu.memory_space<vmem>>, vector<1x8x32xf32>,
    return
  }
  func.func @transform_0(%arg0: i32) -> (i32, i32, i32) {
    %c0_i32 = arith.constant 0 : i32
    %c0_i32_0 = arith.constant 0 : i32
    %c0_i32_1 = arith.constant 0 : i32
    return %arg0, %c0_i32, %c0_i32_0 : i32, i32, i32
  }
  func.func @transform_1(%arg0: i32) -> (i32, i32, i32) {
    %c0_i32 = arith.constant 0 : i32
    %c0_i32_0 = arith.constant 0 : i32
    %c0_i32_1 = arith.constant 0 : i32
    return %arg0, %c0_i32, %c0_i32_0 : i32, i32, i32
  }
  func.func @transform_2(%arg0: i32) -> (i32, i32) {
    %c0_i32 = arith.constant 0 : i32
    %c0_i32_0 = arith.constant 0 : i32
    %c0_i32_1 = arith.constant 0 : i32
    return %c0_i32, %c0_i32_0 : i32, i32
  }
  func.func @transform_3(%arg0: i32) -> (i32, i32) {
    %c0_i32 = arith.constant 0 : i32
    %c0_i32_0 = arith.constant 0 : i32
    %c0_i32_1 = arith.constant 0 : i32
    return %c0_i32, %c0_i32_0 : i32, i32
  }
  func.func @transform_4(%arg0: i32) -> (i32, i32) {
    %c0_i32 = arith.constant 0 : i32
    %c0_i32_0 = arith.constant 0 : i32
    %c0_i32_1 = arith.constant 0 : i32
    return %c0_i32, %c0_i32_0 : i32, i32
  }
  func.func @transform_5(%arg0: i32) -> (i32, i32) {
    %c0_i32 = arith.constant 0 : i32
    %c0_i32_0 = arith.constant 0 : i32
    %c0_i32_1 = arith.constant 0 : i32
    return %c0_i32, %c0_i32_0 : i32, i32
  }
  func.func @transform_6(%arg0: i32) -> (i32, i32) {
    %c0_i32 = arith.constant 0 : i32
    %c0_i32_0 = arith.constant 0 : i32
    %c0_i32_1 = arith.constant 0 : i32
    return %c0_i32, %c0_i32_0 : i32, i32
  }
  func.func @transform_7(%arg0: i32) -> (i32, i32) {
    %c0_i32 = arith.constant 0 : i32
    %c0_i32_0 = arith.constant 0 : i32
    %c0_i32_1 = arith.constant 0 : i32
    return %c0_i32, %c0_i32_0 : i32, i32
  }
  func.func @transform_8(%arg0: i32) -> (i32, i32) {
    %c0_i32 = arith.constant 0 : i32
    %c0_i32_0 = arith.constant 0 : i32
    %c0_i32_1 = arith.constant 0 : i32
    return %c0_i32, %c0_i32_0 : i32, i32
  }
  func.func @transform_9(%arg0: i32) -> (i32, i32) {
    %c0_i32 = arith.constant 0 : i32
    %c0_i32_0 = arith.constant 0 : i32
    %c0_i32_1 = arith.constant 0 : i32
    return %c0_i32, %c0_i32_0 : i32, i32
  }
  func.func @transform_10(%arg0: i32) -> (i32, i32) {
    %c0_i32 = arith.constant 0 : i32
    %c0_i32_0 = arith.constant 0 : i32
    %c0_i32_1 = arith.constant 0 : i32
    return %c0_i32, %c0_i32_0 : i32, i32
  }
  func.func @transform_11(%arg0: i32) -> (i32, i32) {
    %c0_i32 = arith.constant 0 : i32
    %c0_i32_0 = arith.constant 0 : i32
    %c0_i32_1 = arith.constant 0 : i32
    return %c0_i32, %c0_i32_0 : i32, i32
  }
  func.func @transform_12(%arg0: i32) -> (i32, i32) {
    %c0_i32 = arith.constant 0 : i32
    %c0_i32_0 = arith.constant 0 : i32
    %c0_i32_1 = arith.constant 0 : i32
    return %c0_i32, %c0_i32_0 : i32, i32
  }
  func.func @transform_13(%arg0: i32) -> (i32, i32) {
    %c0_i32 = arith.constant 0 : i32
    %c0_i32_0 = arith.constant 0 : i32
    %c0_i32_1 = arith.constant 0 : i32
    return %c0_i32, %c0_i32_0 : i32, i32
  }
  func.func @transform_14(%arg0: i32) -> (i32, i32) {
    %c0_i32 = arith.constant 0 : i32
    %c0_i32_0 = arith.constant 0 : i32
    %c0_i32_1 = arith.constant 0 : i32
    return %c0_i32, %c0_i32_0 : i32, i32
  }
  func.func @transform_15(%arg0: i32) -> (i32, i32) {
    %c0_i32 = arith.constant 0 : i32
    %c0_i32_0 = arith.constant 0 : i32
    %c0_i32_1 = arith.constant 0 : i32
    return %c0_i32, %c0_i32_0 : i32, i32
  }
  func.func @transform_16(%arg0: i32) -> (i32, i32) {
    %c0_i32 = arith.constant 0 : i32
    %c0_i32_0 = arith.constant 0 : i32
    %c0_i32_1 = arith.constant 0 : i32
    return %c0_i32, %c0_i32_0 : i32, i32
  }
  func.func @transform_17(%arg0: i32) -> (i32, i32) {
    %c0_i32 = arith.constant 0 : i32
    %c0_i32_0 = arith.constant 0 : i32
    %c0_i32_1 = arith.constant 0 : i32
    return %c0_i32, %c0_i32_0 : i32, i32
  }
  func.func @transform_18(%arg0: i32) -> (i32, i32) {
    %c0_i32 = arith.constant 0 : i32
    %c0_i32_0 = arith.constant 0 : i32
    %c0_i32_1 = arith.constant 0 : i32
    return %c0_i32, %c0_i32_0 : i32, i32
  }
  func.func @transform_19(%arg0: i32) -> (i32, i32) {
    %c0_i32 = arith.constant 0 : i32
    %c0_i32_0 = arith.constant 0 : i32
    %c0_i32_1 = arith.constant 0 : i32
    return %c0_i32, %c0_i32_0 : i32, i32
  }
  func.func @transform_20(%arg0: i32) -> (i32, i32, i32) {
    %c0_i32 = arith.constant 0 : i32
    %c0_i32_0 = arith.constant 0 : i32
    %c0_i32_1 = arith.constant 0 : i32
    return %arg0, %c0_i32, %c0_i32_0 : i32, i32, i32
  }
  func.func @transform_21(%arg0: i32) -> (i32, i32, i32, i32) {
    %c0_i32 = arith.constant 0 : i32
    %c0_i32_0 = arith.constant 0 : i32
    %c0_i32_1 = arith.constant 0 : i32
    %c0_i32_2 = arith.constant 0 : i32
    return %arg0, %c0_i32, %c0_i32_0, %c0_i32_1 : i32, i32, i32, i32
  }
  func.func @transform_22(%arg0: i32) -> (i32, i32, i32, i32) {
    %c0_i32 = arith.constant 0 : i32
    %c0_i32_0 = arith.constant 0 : i32
    %c0_i32_1 = arith.constant 0 : i32
    %c0_i32_2 = arith.constant 0 : i32
    return %arg0, %c0_i32, %c0_i32_0, %c0_i32_1 : i32, i32, i32, i32
  }
}

</mosaic_0001>

<bundles_post_ra>
// kernel: tpu_custom_call.1
= control target key start
LH: loop header
LB: loop body
LE: loop exit
PB: predicated region body
PF: predicated region fallthrough
CT: control target
= control target key end

     0   :  { %s4171_s0 = inlined_call_operand.vmem [shape: f32[2,8,32], index: 0, kind: input, shape index: {}]   ;;  %s4172_s1 = inlined_call_operand.vmem [shape: f32[2,8,32], index: 1, kind: input, shape index: {}]   ;;  %s4173_s2 = inlined_call_operand.hbm [shape: f32[8,8], index: 2, kind: input, shape index: {}]   ;;  %s4174_s3 = inlined_call_operand.hbm [shape: f32[8,8], index: 3, kind: input, shape index: {}]   ;;  %s4175_s4 = inlined_call_operand.vmem [shape: bf16[32,96], index: 4, kind: input, shape index: {}]   ;;  %s4176_s5 = inlined_call_operand.vmem [shape: f32[1,96], index: 5, kind: input, shape index: {}]   ;;  %s4177_s6 = inlined_call_operand.hbm [shape: bf16[32,32], index: 6, kind: input, shape index: {}]   ;;  %s4178_s7 = inlined_call_operand.vmem [shape: f32[1,32], index: 7, kind: input, shape index: {}]   ;;  %s4179_s8 = inlined_call_operand.hbm [shape: bf16[32,32], index: 8, kind: input, shape index: {}]   ;;  %s4180_s9 = inlined_call_operand.vmem [shape: f32[1,32], index: 9, kind: input, shape index: {}]   ;;  %s4181_s10 = inlined_call_operand.hbm [shape: bf16[32,64], index: 10, kind: input, shape index: {}]   ;;  %s4182_s11 = inlined_call_operand.vmem [shape: f32[1,64], index: 11, kind: input, shape index: {}]   ;;  %s4183_s12 = inlined_call_operand.hbm [shape: bf16[32,32], index: 12, kind: input, shape index: {}]   ;;  %s4184_s13 = inlined_call_operand.vmem [shape: f32[1,32], index: 13, kind: input, shape index: {}]   ;;  %s4185_s14 = inlined_call_operand.hbm [shape: bf16[32,64], index: 14, kind: input, shape index: {}]   ;;  %s4186_s15 = inlined_call_operand.hbm [shape: f32[1,64], index: 15, kind: input, shape index: {}]   ;;  %s4187_s16 = inlined_call_operand.vmem [shape: bf16[64,32], index: 16, kind: input, shape index: {}]   ;;  %s4188_s17 = inlined_call_operand.vmem [shape: f32[1,32], index: 17, kind: input, shape index: {}]   ;;  %s4189_s18 = inlined_call_operand.vmem [shape: f32[3,32], index: 18, kind: input, shape index: {}]   ;;  %s4190_s19 = inlined_call_operand.vmem [shape: f32[3,32], index: 19, kind: input, shape index: {}]   ;;  %s4191_s20 = inlined_call_operand.hbm [shape: f32[2,8,32], index: 20, kind: output, shape index: {0}]   ;;  %s4192_s21 = inlined_call_operand.hbm [shape: bf16[2,4,8,8], index: 21, kind: output, shape index: {1}]   ;;  %s4193_s22 = inlined_call_operand.hbm [shape: bf16[2,4,8,8], index: 22, kind: output, shape index: {2}]  }
   0x1   :  { %4216 = sst [smem:[#allocation34_spill]] %s4171_s0 }
   0x2   :  { %4217 = sst [smem:[#allocation35_spill]] %s4172_s1 }
   0x3   :  { %4218 = sst [smem:[#allocation36_spill]] %s4173_s2 }
   0x4   :  { %4219 = sst [smem:[#allocation37_spill]] %s4174_s3 }
   0x5   :  { %4220 = sst [smem:[#allocation38_spill]] %s4175_s4 }
   0x6   :  { %4221 = sst [smem:[#allocation39_spill]] %s4176_s5 }
   0x7   :  { %4222 = sst [smem:[#allocation40_spill]] %s4177_s6 }
   0x8   :  { %4223 = sst [smem:[#allocation41_spill]] %s4178_s7 }
   0x9   :  { %4224 = sst [smem:[#allocation42_spill]] %s4179_s8 }
   0xa   :  { %4225 = sst [smem:[#allocation43_spill]] %s4183_s12 }
   0xb   :  { %4226 = sst [smem:[#allocation44_spill]] %s4191_s20 }
   0xc   :  { %28 = vsyncpa [#allocation4], 0 }
   0xd   :  { %29 = vsyncpa [#allocation7], 0 }
   0xe   :  { %30 = vsyncpa [#allocation10], 0 }
   0xf   :  { %31 = vsyncpa [#allocation13], 0 }
  0x10   :  { %32 = vsyncpa [#allocation16], 0 }
  0x11   :  { %33 = vsyncpa [#allocation5], 0 }
  0x12   :  { %35 = vsyncpa [#allocation5 + $0x1], 0 }
  0x13   :  { %36 = vsyncpa [#allocation19], 0 }
  0x14   :  { %38 = vsyncpa [#allocation19 + $0x1], 0  ;;  %s3599_s3 = smov 0   ;;  %s3601_s28 = smov 0  }
  0x15   :  { %s3603_s29 = smov 0   ;;  %s3605_s30 = smov 0  }
  0x16 LB: > { %4227 = sst [smem:[#allocation28_spill]] %s3440_s3  ;;  %s3620_s4 = sadd.s32 4294967295, %s3452_s30   ;;  %s3452_s30 = sphi %s3605_s30, %s4273_s30   ;;  %s3448_s29 = sphi %s3603_s29, %s4275_s29   ;;  %s3444_s28 = sphi %s3601_s28, %s4277_s28   ;;  %s3440_s3 = sphi %s3599_s3, %s4276_s3  }
  0x17   : > { %4228 = sst [smem:[#allocation29_spill]] %s3448_s29  ;;  %s4195_s0 = sadd.s32 4294967294, %s3452_s30  }
  0x18   : > { %4229 = sst [smem:[#allocation30_spill]] %s3452_s30  ;;  %s3624_s23 = sadd.s32 1, %s3452_s30  }
  0x19   : > { %4230 = sst [smem:[#allocation31_spill]] %s3624_s23  ;;  %s481_s1 = sadd.s32 1, %s3448_s29 }
  0x1a   : > { %s478_s5 = ssub.s32 %s3452_s30, %s3624_s23  ;;  %p491_p0 = scmp.ne.s32.totalorder %s3448_s29, %s3444_s28 }
  0x1b   : > { %p479_p1 = scmp.eq.s32.totalorder %s478_s5, 0  ;;  %p492_p2 = scmp.eq.s32.totalorder %s3620_s4, 1 }
  0x1c   : > { %p497_p3 = scmp.ne.s32.totalorder %s3444_s28, %s3440_s3  ;;  %p498_p4 = scmp.eq.s32.totalorder %s4195_s0, 1 }
  0x1d   : > { %s3637_s24 = scalar_select %p479_p1, %s3448_s29, %s481_s1  }
  0x1e   : > { %p3639_p5 = por %p492_p2, %p491_p0  ;;  %p3643_p6 = por %p498_p4, %p497_p3 }
  0x1f   : > { %4231 = sst [smem:[#allocation32_spill]] %s3637_s24  ;;  %p2600_p7 = scmp.ge.s32.totalorder %s3452_s30, 1 }
  0x20   : > { %s4232_s6 = scalar_select %p3639_p5, 1, 0 }
  0x21   : > { %s4233_s25 = scalar_select %p3643_p6, 1, 0 }
  0x22   : > { %p557_p8 = scmp.lt.s32.totalorder %s3452_s30, 3  ;;  %p4201_p9 = scmp.eq.s32.totalorder %s3620_s4, 0 }
  0x23   : > { %4234 = sst [smem:[#allocation33_spill]] %s4233_s25  ;;  %s3454_s2 = smov [#allocation6]  }
  0x24   : > { %p3650_p10 = pnand %p2600_p7, %p557_p8  ;;  %s581_s27 = sshll.u32 %s3454_s2, 4  ;;  %s582_s27 = int_to_ptr.vmem [resolvable:$true] %s581_s27 }
  0x25   : > { %s3455_s5 = smov [#allocation9]   ;;  %s3456_s24 = smov [#allocation12]  }
  0x26   : > { %s4235_s26 = scalar_select %p3650_p10, 1, 0 }
  0x27   : > { %p2943_p11 = pneg %p3650_p10  ;;  %s613_s0 = sshll.u32 %s3455_s5, 4  ;;  %s614_s0 = int_to_ptr.vmem [resolvable:$true] %s613_s0 }
  0x28   : > { %s645_s29 = sshll.u32 %s3456_s24, 4  ;;  %s3119_s2 = scalar_lea.vmem %s582_s27, 128  ;;  %s646_s29 = int_to_ptr.vmem [resolvable:$true] %s645_s29 }
  0x29   : > { %p3658_p12 = pnand %p4201_p9, %p2943_p11  ;;  %p3120_p0 = scmp.ne.s32.totalorder %s582_s27, %s3119_s2 }
  0x2a   : > { %p3127_p3 = scmp.lt.s32.totalorder %s582_s27, %s582_s27  ;;  %p3128_p4 = scmp.lt.s32.totalorder %s3119_s2, %s3119_s2 }
  0x2b   : > { %p3664_p13 = pneg %p3658_p12 }
  0x2c   : > { %p3129_p7 = por %p3128_p4, %p3127_p3 }
  0x2d   : > { %p3122_p1 = pnand %p3120_p0, %p3664_p13 }
  0x2f   : > { %p3123_p2 = pneg %p3122_p1 }
  0x31   : > { %p3130_p8 = pnand %p3129_p7, %p3123_p2 }
  0x33   : > { %3133 = shalt.err (!%p3130_p8)
}
  0x34   : > { %s4238_s25 = sld [smem:[#allocation37_spill]]  ;;  %s3145_s3 = scalar_lea.vmem %s614_s0, 256 }
  0x35   : > { %p3146_p11 = scmp.ne.s32.totalorder %s614_s0, %s3145_s3  ;;  %p3153_p5 = scmp.lt.s32.totalorder %s614_s0, %s614_s0 }
  0x36   : > { %p3154_p0 = scmp.lt.s32.totalorder %s3145_s3, %s3145_s3 }
  0x37   : > { %p3148_p9 = pnand %p3146_p11, %p3664_p13 }
  0x38   : > { %p3155_p1 = por %p3154_p0, %p3153_p5 }
  0x39   : > { %p3149_p6 = pneg %p3148_p9 }
  0x3a   : > { %2949 = dma.hbm_to_vmem [thread:$0]  (!%p3658_p12), %s4238_s25, 128, %s582_s27, [#allocation7]  }
  0x3b   : > { %p3156_p10 = pnand %p3155_p1, %p3149_p6 }
  0x3d   : > { %3159 = shalt.err (!%p3156_p10)
}
  0x3e   : > { %s3457_s2 = smov 64   ;;  %s3458_s30 = smov 4  }
  0x3f   : > { %s4239_s8 = sld [smem:[#allocation42_spill]]  ;;  %s3171_s27 = scalar_lea.vmem %s646_s29, 256 }
  0x40   : > { %p3172_p9 = scmp.ne.s32.totalorder %s646_s29, %s3171_s27  ;;  %p3179_p6 = scmp.lt.s32.totalorder %s646_s29, %s646_s29 }
  0x41   : > { %p3180_p10 = scmp.lt.s32.totalorder %s3171_s27, %s3171_s27 }
  0x42   : > { %p3174_p2 = pnand %p3172_p9, %p3664_p13 }
  0x43   : > { %p3181_p3 = por %p3180_p10, %p3179_p6 }
  0x44   : > { %p3175_p5 = pneg %p3174_p2 }
  0x45   : > { %2955 = dma.hbm_to_vmem [thread:$0]  (!%p3658_p12), %s4239_s8, 256, %s614_s0, [#allocation10], %s3457_s2, %s3457_s2, %s3458_s30  }
  0x46   : > { %p3182_p4 = pnand %p3181_p3, %p3175_p5 }
  0x48   : > { %3185 = shalt.err (!%p3182_p4)
}
  0x49   : > { %s4240_s12 = sld [smem:[#allocation43_spill]]  ;;  %s3459_s0 = smov [#allocation3]  }
  0x4a   : > { %s570_s5 = sshll.u32 %s3459_s0, 4  ;;  %s3460_s25 = smov [#allocation8]   ;;  %s571_s5 = int_to_ptr.vmem [resolvable:$true] %s570_s5 }
  0x4b   : > { %s597_s8 = sshll.u32 %s3460_s25, 4  ;;  %s3197_s20 = scalar_lea.vmem %s571_s5, 128  ;;  %s598_s8 = int_to_ptr.vmem [resolvable:$true] %s597_s8 }
  0x4c   : > { %p3198_p7 = scmp.ne.s32.totalorder %s571_s5, %s3197_s20  ;;  %p3205_p0 = scmp.lt.s32.totalorder %s571_s5, %s571_s5 }
  0x4d   : > { %p3206_p1 = scmp.lt.s32.totalorder %s3197_s20, %s3197_s20 }
  0x4e   : > { %p3200_p8 = pnand %p3198_p7, %p3664_p13 }
  0x4f   : > { %2961 = dma.hbm_to_vmem [thread:$0]  (!%p3658_p12), %s4240_s12, 256, %s646_s29, [#allocation13], %s3457_s2, %s3457_s2, %s3458_s30  }
  0x50   : > { %p3201_p11 = pneg %p3200_p8  ;;  %p3207_p9 = por %p3206_p1, %p3205_p0 }
  0x52   : > { %p3208_p2 = pnand %p3207_p9, %p3201_p11 }
  0x54   : > { %3211 = shalt.err (!%p3208_p2)
}
  0x55   : > { %s4241_s29 = sld [smem:[#allocation36_spill]]  ;;  %s3223_s24 = scalar_lea.vmem %s598_s8, 256 }
  0x56   : > { %p3224_p5 = scmp.ne.s32.totalorder %s598_s8, %s3223_s24  ;;  %p3231_p3 = scmp.lt.s32.totalorder %s598_s8, %s598_s8 }
  0x57   : > { %p3232_p4 = scmp.lt.s32.totalorder %s3223_s24, %s3223_s24 }
  0x58   : > { %p3226_p6 = pnand %p3224_p5, %p3664_p13 }
  0x59   : > { %p3233_p7 = por %p3232_p4, %p3231_p3 }
  0x5a   : > { %p3227_p10 = pneg %p3226_p6 }
  0x5b   : > { %2946 = dma.hbm_to_vmem [thread:$0]  (!%p3658_p12), %s4241_s29, 128, %s571_s5, [#allocation4]  }
  0x5c   : > { %p3234_p8 = pnand %p3233_p7, %p3227_p10 }
  0x5e   : > { %3237 = shalt.err (!%p3234_p8)
}
  0x5f   : > { %s4242_s25 = sld [smem:[#allocation40_spill]]  ;;  %s3461_s5 = smov [#allocation11]  }
  0x60   : > { %s629_s27 = sshll.u32 %s3461_s5, 4  ;;  %s3462_s3 = smov [#allocation14]   ;;  %s630_s27 = int_to_ptr.vmem [resolvable:$true] %s629_s27 }
  0x61   : > { %s661_s29 = sshll.u32 %s3462_s3, 4  ;;  %s3249_s12 = scalar_lea.vmem %s630_s27, 256  ;;  %s662_s29 = int_to_ptr.vmem [resolvable:$true] %s661_s29 }
  0x62   : > { %p3250_p11 = scmp.ne.s32.totalorder %s630_s27, %s3249_s12  ;;  %p3257_p9 = scmp.lt.s32.totalorder %s630_s27, %s630_s27 }
  0x63   : > { %p3258_p2 = scmp.lt.s32.totalorder %s3249_s12, %s3249_s12 }
  0x64   : > { %p3252_p0 = pnand %p3250_p11, %p3664_p13 }
  0x65   : > { %2952 = dma.hbm_to_vmem [thread:$0]  (!%p3658_p12), %s4242_s25, 256, %s598_s8, [#allocation7], %s3457_s2, %s3457_s2, %s3458_s30  }
  0x66   : > { %p3253_p1 = pneg %p3252_p0  ;;  %p3259_p5 = por %p3258_p2, %p3257_p9 }
  0x68   : > { %p3260_p6 = pnand %p3259_p5, %p3253_p1 }
  0x6a   : > { %3263 = shalt.err (!%p3260_p6)
}
  0x6b   : > { %2958 = dma.hbm_to_vmem [thread:$0]  (!%p3658_p12), %s4181_s10, 256, %s630_s27, [#allocation10], %s3457_s2, %s3457_s2, %s3458_s30  }
  0x6c   : > { %s3275_s20 = scalar_lea.vmem %s662_s29, 256  ;;  %p3283_p7 = scmp.lt.s32.totalorder %s662_s29, %s662_s29 }
  0x6d   : > { %p3276_p10 = scmp.ne.s32.totalorder %s662_s29, %s3275_s20  ;;  %p3284_p8 = scmp.lt.s32.totalorder %s3275_s20, %s3275_s20 }
  0x6f   : > { %p3278_p3 = pnand %p3276_p10, %p3664_p13  ;;  %p3285_p11 = por %p3284_p8, %p3283_p7 }
  0x71   : > { %p3279_p4 = pneg %p3278_p3 }
  0x73   : > { %p3286_p0 = pnand %p3285_p11, %p3279_p4 }
  0x75   : > { %3289 = shalt.err (!%p3286_p0)
}
  0x76   : > { %2964 = dma.hbm_to_vmem [thread:$0]  (!%p3658_p12), %s4185_s14, 256, %s662_s29, [#allocation13], %s3457_s2, %s3457_s2, %s3458_s30  }
  0x77   : > { %s3463_s25 = smov [#allocation15]  }
  0x78   : > { %s675_s5 = sshll.u32 %s3463_s25, 4  ;;  %s676_s5 = int_to_ptr.vmem [resolvable:$true] %s675_s5 }
  0x79   : > { %s3301_s27 = scalar_lea.vmem %s676_s5, 16  ;;  %s3308_s3 = scalar_lea.vmem %s676_s5, 32 }
  0x7a   : > { %p3302_p1 = scmp.ne.s32.totalorder %s676_s5, %s3301_s27  ;;  %p3309_p5 = scmp.lt.s32.totalorder %s676_s5, %s676_s5 }
  0x7b   : > { %p3310_p6 = scmp.lt.s32.totalorder %s3308_s3, %s3301_s27 }
  0x7c   : > { %p3304_p9 = pnand %p3302_p1, %p3664_p13 }
  0x7d   : > { %p3311_p10 = por %p3310_p6, %p3309_p5 }
  0x7e   : > { %p3305_p2 = pneg %p3304_p9 }
  0x80   : > { %p3312_p3 = pnand %p3311_p10, %p3305_p2 }
  0x82   : > { %3315 = shalt.err (!%p3312_p3)
}
  0x83   : > { %2967 = dma.hbm_to_vmem [thread:$0]  (!%p3658_p12), %s4186_s15, 16, %s676_s5, [#allocation16]  }
  0x84   : > { %p4243_p4 = scmp.ne.s32.totalorder %s4235_s26, 0 }
  0x85   : > { %p4244_p7 = scmp.eq.s32.totalorder (!%p4243_p4), %s3620_s4, 0 }
  0x86   : > { %714 = sbr.rel (%p4243_p4) target bundleno = 4267 (0x10ab), region = 100 }
  0x8b   : > { %3411 = dma.done.wait (%p4244_p7), [#allocation4], 128   ;;  %p4245_p13 = pmov %p4244_p7 }
  0x8c   : > { %p4246_p8 = pmov %p4244_p7 }
  0x8d   : > { %3413 = vsyncadd (%p4245_p13), [#allocation4], 4294967168 }
  0x8e   : > { %3415 = dma.done.wait (%p4246_p8), [#allocation7], 384   ;;  %p4247_p11 = pmov %p4244_p7 }
  0x8f   : > { %p4248_p0 = pmov %p4244_p7 }
  0x90   : > { %3417 = vsyncadd (%p4247_p11), [#allocation7], 4294966912 }
  0x91   : > { %3419 = dma.done.wait (%p4248_p0), [#allocation10], 512   ;;  %p4249_p12 = pmov %p4248_p0 }
  0x92   : > { %p4250_p1 = pmov %p4248_p0 }
  0x93   : > { %3421 = vsyncadd (%p4249_p12), [#allocation10], 4294966784 }
  0x94   : > { %3423 = dma.done.wait (%p4250_p1), [#allocation13], 512   ;;  %p4251_p9 = pmov %p4248_p0 }
  0x95   : > { %p4252_p2 = pmov %p4248_p0 }
  0x96   : > { %3425 = vsyncadd (%p4251_p9), [#allocation13], 4294966784 }
  0x97   : > { %3427 = dma.done.wait (%p4252_p2), [#allocation16], 16   ;;  %p4253_p5 = pmov %p4248_p0 }
  0x98   : > { %p817_p6 = scmp.lt.s32.totalorder %s3620_s4, 1  ;;  %v3464_v0 = vmov 0.0   ;;  %vm3465_vm0 = vmmov 0   ;;  %s4254_s2 = sld [smem:[#allocation34_spill]]  ;;  %vm854_vm1 = vcmask 261120   ;;  %vm902_vm2 = vcmask 64512  }
  0x99   : > { %3429 = vsyncadd (%p4253_p5), [#allocation16], 4294967280  ;;  %2749 = vmatprep.subr.bf16.mxu1 %v3464_v0  ;;  %2753 = vmatprep.mubr.msk.bf16.mxu1 %vm3465_vm0, %v3464_v0  ;;  %s4255_s0 = sld [smem:[#allocation38_spill]]  ;;  %s3466_s24 = smov 120   ;;  %v828_v23 = vld [vmem:[#allocation3] sm:$0xff]  ;;  %vm961_vm3 = vcmask 60416  }
  0x9a   : > { %s3766_s30 = scalar_select %p817_p6, %s3620_s4, 1  ;;  %2763 = vmatprep.subr.bf16.mxu0 %v3464_v0  ;;  %2765 = vmatprep.mubr.msk.bf16.mxu0 %vm3465_vm0, %v3464_v0  ;;  %vm968_vm4 = vcmask 1043456   ;;  %vm1129_vm5 = vcmask 130112   ;;  %vm1247_vm6 = vcmask 195712   ;;  %vm1365_vm7 = vcmask 261312  }
  0x9b   : > { %s4256_s8 = sld [smem:[#allocation39_spill]]  ;;  %s3467_s26 = smov 96   ;;  %vm2261_vm8 = vcmask 523264  }
  0x9c   : > { %s2622_s23 = sshll.u32 %s3766_s30, 3  ;;  %s3468_s1 = smov 80  }
  0x9d   : > { %s3471_s20 = smov 112   ;;  %s3472_s12 = smov 104  }
  0x9e   : > { %s820_s29 = scalar_lea.vmem %s4254_s2, %s2622_s23  ;;  %s4213_s2 = smov 88  }
  0x9f   : > { %v3054_v1 = vld [vmem:[%s4255_s0 + $0x8] sm:$0xff]   ;;  %v3055_v2 = vld [vmem:[%s4255_s0] sm:$0xff]   ;;  %s3473_s25 = smov 56   ;;  %s4207_s5 = smov 64  }
  0xa0   : > { %2750 = vmatpush3.bf16.msra.mxu1 %v3054_v1  ;;  %v3783_v3 = vld [vmem:[%s820_s29] sm:$0xff]  ;;  %s3470_s29 = smov 72   ;;  %s3475_s27 = smov 40  }
  0xa1   : > { %2751 = vmatprep.subr.bf16.mxu1 %v3464_v0  ;;  %v830_v4 = vpack.c.bf16 %v3783_v3, %v3783_v3  ;;  %v2624_v5 = vld [vmem:[%s4256_s8] ss:$0 sm:$0xff]  ;;  %s3476_s3 = smov 48   ;;  %s3846_s8 = sand.u32 1, %s3444_s28  }
  0xa2   : > { %s4257_s7 = sld [smem:[#allocation41_spill]]  ;;  %p4264_p3 = scmp.ne.s32.totalorder %s4232_s6, 0 }
  0xa4   : > { %2752 = vmatpush3.bf16.msra.mxu1 %v3055_v2 }
  0xa5   : > { %2757 = vmatprep.subr.bf16.mxu1 %v3464_v0 }
  0xa7   : > { %2754 = vmatmul.mubr.msk.bf16.vlgmr.msra.gmra.mxu1 %vm854_vm1, %v830_v4 }
  0xa8   : > { %2759 = vmatprep.mubr.msk.bf16.mxu1 %vm3465_vm0, %v3464_v0 }
 0x167   : > { %v892_v6 = vpop.f32.mrf.mxu1 }
 0x168   : > { %v893_v7 = vadd.f32 %v2624_v5, %v892_v6 }
 0x169   : > { %v2755_v8 = vpop.f32.mrf.mxu1 }
 0x16a   : > { %v3795_v9 = vpack.c.bf16 %v893_v7, %v893_v7 }
 0x16b   : > { %v895_v10 = vpop.f32.mrf.mxu1 }
 0x16c   : > { %1013 = vrot.lane.b32.xlu1 %v3795_v9, %s3466_s24  ;;  %900 = vrot.lane.b32.xlu0 %v3795_v9, %s3467_s26 }
 0x16d   : > { %v2756_v11 = vpop.f32.mrf.mxu1 }
 0x170   : > { %1133 = vrot.lane.b32.xlu1 %v3795_v9, %s3468_s1  ;;  %1015 = vrot.lane.b32.xlu0 %v3795_v9, %s4213_s2 }
 0x174   : > { %1251 = vrot.lane.b32.xlu1 %v3795_v9, %s3470_s29  ;;  %1131 = vrot.lane.b32.xlu0 %v3795_v9, %s3471_s20 }
 0x178   : > { %1249 = vrot.lane.b32.xlu0 %v3795_v9, %s3472_s12 }
 0x1de   : > { %v901_v12 = vpop.permute.xlu0 %900  ;;  %v1014_v15 = vpop.permute.xlu1 %1013 }
 0x1df   : > { %v907_v13 = vsel %vm902_vm2, %v901_v12, 0 }
 0x1e0   : > { %2758 = vmatpush3.bf16.xpose.msra.mxu1 %v907_v13 }
 0x1e1   : > { %2769 = vmatprep.subr.bf16.mxu1 %v3464_v0 }
 0x1e2   : > { %v1016_v14 = vpop.permute.xlu0 %1015  ;;  %v1134_v17 = vpop.permute.xlu1 %1133 }
 0x1e3   : > { %v1021_v16 = vsel %vm902_vm2, %v1016_v14, 0  ;;  %v1139_v18 = vsel %vm902_vm2, %v1134_v17, 0 }
 0x1e6   : > { %v1252_v19 = vpop.permute.xlu1 %1251  ;;  %v1132_v20 = vpop.permute.xlu0 %1131 }
 0x1e7   : > { %2760 = vmatmul.mubr.msk.bf16.vlgmr.msra.gmra.mxu1 %vm902_vm2, %v3795_v9  ;;  %v1257_v21 = vsel %vm902_vm2, %v1252_v19, 0 }
 0x1e8   : > { %2770 = vmatpush3.bf16.xpose.msra.mxu1 %v1021_v16  ;;  %2771 = vmatprep.mubr.msk.bf16.mxu1 %vm3465_vm0, %v3464_v0 }
 0x1e9   : > { %2781 = vmatprep.subr.bf16.mxu1 %v3464_v0 }
 0x1ea   : > { %v1250_v22 = vpop.permute.xlu0 %1249 }
 0x1ef   : > { %2772 = vmatmul.mubr.msk.bf16.vlgmr.msra.gmra.mxu1 %vm902_vm2, %v1014_v15 }
 0x1f0   : > { %2782 = vmatpush3.bf16.xpose.msra.mxu1 %v1139_v18  ;;  %2783 = vmatprep.mubr.msk.bf16.mxu1 %vm3465_vm0, %v3464_v0 }
 0x1f1   : > { %2793 = vmatprep.subr.bf16.mxu1 %v3464_v0 }
 0x1f7   : > { %2784 = vmatmul.mubr.msk.bf16.vlgmr.msra.gmra.mxu1 %vm902_vm2, %v1132_v20 }
 0x1f8   : > { %2794 = vmatpush3.bf16.xpose.msra.mxu1 %v1257_v21  ;;  %2795 = vmatprep.mubr.msk.bf16.mxu1 %vm3465_vm0, %v3464_v0 }
 0x1f9   : > { %2805 = vmatprep.subr.bf16.mxu1 %v3464_v0 }
 0x1ff   : > { %2796 = vmatmul.mubr.msk.bf16.vlgmr.msra.gmra.mxu1 %vm902_vm2, %v1250_v22 }
 0x200   : > { %2809 = vmatprep.mubr.msk.bf16.mxu1 %vm3465_vm0, %v3464_v0 }
 0x2a7   : > { %v943_v24 = vpop.f32.mrf.mxu1 }
 0x2a8   : > { %v944_v25 = vadd.f32 %v943_v24, %v828_v23 }
 0x2a9   : > { %v2761_v26 = vpop.f32.mrf.mxu1 }
 0x2aa   : > { %v949_v27 = vsel %vm902_vm2, %v944_v25, -inf }
 0x2ab   : > { %950 = vmax.xlane.f32.xlu1 %v949_v27  ;;  %v946_v28 = vpop.f32.mrf.mxu1 }
 0x2ad   : > { %v2762_v29 = vpop.f32.mrf.mxu1 }
 0x2af   : > { %v1057_v30 = vpop.f32.mrf.mxu1 }
 0x2b0   : > { %v1058_v31 = vadd.f32 %v1057_v30, %v828_v23 }
 0x2b1   : > { %v2773_v32 = vpop.f32.mrf.mxu1 }
 0x2b2   : > { %v1063_v33 = vsel %vm902_vm2, %v1058_v31, -inf }
 0x2b3   : > { %1064 = vmax.xlane.f32.xlu0 %v1063_v33  ;;  %v1060_v34 = vpop.f32.mrf.mxu1 }
 0x2b5   : > { %v2774_v35 = vpop.f32.mrf.mxu1 }
 0x2b7   : > { %v1175_v36 = vpop.f32.mrf.mxu1 }
 0x2b8   : > { %v1176_v37 = vadd.f32 %v1175_v36, %v828_v23 }
 0x2b9   : > { %v2785_v38 = vpop.f32.mrf.mxu1 }
 0x2ba   : > { %v1181_v39 = vsel %vm902_vm2, %v1176_v37, -inf  ;;  %v3056_v38 = vld [vmem:[#allocation8 + $0x8] sm:$0xff]  }
 0x2bb   : > { %1182 = vmax.xlane.f32.xlu0 %v1181_v39  ;;  %v1178_v40 = vpop.f32.mrf.mxu1  ;;  %2806 = vmatpush3.bf16.msra.mxu1 %v3056_v38 }
 0x2bc   : > { %v3057_v40 = vld [vmem:[#allocation8] sm:$0xff]   ;;  %2807 = vmatprep.subr.bf16.mxu1 %v3464_v0 }
 0x2bd   : > { %v2786_v41 = vpop.f32.mrf.mxu1 }
 0x2bf   : > { %v1293_v42 = vpop.f32.mrf.mxu1  ;;  %2808 = vmatpush3.bf16.msra.mxu1 %v3057_v40 }
 0x2c0   : > { %v1294_v43 = vadd.f32 %v1293_v42, %v828_v23  ;;  %2821 = vmatprep.subr.bf16.mxu1 %v3464_v0 }
 0x2c1   : > { %v2797_v44 = vpop.f32.mrf.mxu1 }
 0x2c2   : > { %v1299_v45 = vsel %vm902_vm2, %v1294_v43, -inf }
 0x2c3   : > { %1300 = vmax.xlane.f32.xlu1 %v1299_v45  ;;  %v1296_v46 = vpop.f32.mrf.mxu1 }
 0x2c5   : > { %v2798_v47 = vpop.f32.mrf.mxu1 }
 0x334   : > { %v951_v48 = vpop.xlane.xlu1 %950 }
 0x335   : > { %v952_v49 = vsub.f32 %v944_v25, %v951_v48 }
 0x337   : > { %v953_v50 = vmul.f32 1.442695, %v952_v49 }
 0x339   : > { %3070 = vpow2.f32 %v953_v50 }
 0x33c   : > { %v1065_v51 = vpop.xlane.xlu0 %1064 }
 0x33d   : > { %v1066_v52 = vsub.f32 %v1058_v31, %v1065_v51 }
 0x33f   : > { %v1067_v53 = vmul.f32 1.442695, %v1066_v52 }
 0x341   : > { %3072 = vpow2.f32 %v1067_v53  ;;  %v2639_v53 = vld [vmem:[%s4257_s7] ss:$0 sm:$0xff] }
 0x344   : > { %v1183_v54 = vpop.xlane.xlu0 %1182 }
 0x345   : > { %v1184_v55 = vsub.f32 %v1176_v37, %v1183_v54 }
 0x346   : > { %v3071_v56 = vpop.eup %3070 }
 0x347   : > { %v1185_v57 = vmul.f32 1.442695, %v1184_v55  ;;  %v955_v58 = vsel %vm902_vm2, %v3071_v56, 0.0 }
 0x348   : > { %956 = vadd.xlane.f32.xlu0 %v955_v58 }
 0x349   : > { %3074 = vpow2.f32 %v1185_v57 }
 0x34c   : > { %v1301_v63 = vpop.xlane.xlu1 %1300 }
 0x34d   : > { %v1302_v1 = vsub.f32 %v1294_v43, %v1301_v63 }
 0x34e   : > { %v3073_v59 = vpop.eup %3072 }
 0x34f   : > { %v1069_v60 = vsel %vm902_vm2, %v3073_v59, 0.0  ;;  %v1303_v2 = vmul.f32 1.442695, %v1302_v1 }
 0x350   : > { %1070 = vadd.xlane.f32.xlu1 %v1069_v60 }
 0x351   : > { %3076 = vpow2.f32 %v1303_v2 }
 0x356   : > { %v3075_v61 = vpop.eup %3074 }
 0x357   : > { %v1187_v62 = vsel %vm902_vm2, %v3075_v61, 0.0 }
 0x358   : > { %1188 = vadd.xlane.f32.xlu0 %v1187_v62 }
 0x35e   : > { %v3077_v4 = vpop.eup %3076 }
 0x35f   : > { %v1305_v5 = vsel %vm902_vm2, %v3077_v4, 0.0 }
 0x361   : > { %1077 = vrot.lane.b32.xlu1 %v3795_v9, %s3473_s25  ;;  %s4212_s25 = sshll.u32 %s3846_s8, 4 }
 0x36e   : > { %963 = vrot.lane.b32.xlu0 %v3795_v9, %s4207_s5  ;;  %s4211_s5 = smov 16  }
 0x372   : > { %1313 = vrot.lane.b32.xlu0 %v3795_v9, %s3475_s27  ;;  %s3851_s27 = scalar_lea.vmem [#allocation18], %s4212_s25  ;;  %s4258_s25 = sld [smem:[#allocation35_spill]] }
 0x378   : > { %s824_s2 = scalar_lea.vmem %s4258_s25, %s2622_s23  ;;  %s2337_s23 = sand.u32 1, %s3620_s4  }
 0x385   : > { %1306 = vadd.xlane.f32.xlu1 %v1305_v5  ;;  %v827_v5 = vld [vmem:[%s824_s2] sm:$0xff]  ;;  %s4072_s2 = scalar_lea.sflag [#allocation19], %s2337_s23 }
 0x396   : > { %1195 = vrot.lane.b32.xlu1 %v3795_v9, %s3476_s3  ;;  %s4209_s3 = smov 8  }
 0x3d1   : > { %v957_v6 = vpop.xlane.xlu0 %956 }
 0x3d2   : > { %3078 = vrcp.f32 %v957_v6  ;;  %v1462_v6 = vpack.c.bf16 %v827_v5, %v827_v5 }
 0x3d9   : > { %v1071_v7 = vpop.xlane.xlu1 %1070 }
 0x3da   : > { %3080 = vrcp.f32 %v1071_v7  ;;  %v3060_v7 = vld [vmem:[#allocation9 + $0x8] sm:$0xff]  }
 0x3dd   : > { %v1078_v15 = vpop.permute.xlu1 %1077 }
 0x3de   : > { %v1083_v17 = vsel %vm968_vm4, %v1078_v15, 0  ;;  %v2644_v15 = vld [vmem:[%s4190_s19] ss:$0 sm:$0xff] }
 0x3df   : > { %v3079_v8 = vpop.eup %3078 }
 0x3e0   : > { %v959_v10 = vmul.f32 %v3079_v8, %v3071_v56  ;;  %v3061_v8 = vld [vmem:[#allocation9] sm:$0xff]  }
 0x3e1   : > { %v1189_v11 = vpop.xlane.xlu0 %1188 }
 0x3e2   : > { %3082 = vrcp.f32 %v1189_v11  ;;  %v960_v12 = vpack.c.bf16 %v959_v10, %v959_v10 }
 0x3e4   : > { %962 = vst.msk [vmem:[%s3851_s27] sm:$0xf] %vm961_vm3, %v960_v12 }
 0x3e5   : > { %v964_v9 = vpop.permute.xlu0 %963 }
 0x3e6   : > { %v970_v13 = vsel %vm968_vm4, %v964_v9, 0 }
 0x3e7   : > { %v3081_v14 = vpop.eup %3080  ;;  %2764 = vmatpush3.bf16.msra.mxu0 %v970_v13  ;;  %v2643_v13 = vld [vmem:[%s4189_s18] ss:$0 sm:$0xff] }
 0x3e8   : > { %2775 = vmatprep.subr.bf16.mxu0 %v3464_v0  ;;  %v1073_v16 = vmul.f32 %v3081_v14, %v3073_v59 }
 0x3e9   : > { %v1314_v25 = vpop.permute.xlu0 %1313 }
 0x3ea   : > { %2766 = vmatmul.mubr.msk.bf16.vlgmr.msra.gmra.mxu0 %vm902_vm2, %v960_v12  ;;  %v1074_v18 = vpack.c.bf16 %v1073_v16, %v1073_v16  ;;  %v1319_v26 = vsel %vm968_vm4, %v1314_v25, 0 }
 0x3eb   : > { %2776 = vmatpush3.bf16.msra.mxu0 %v1083_v17  ;;  %2777 = vmatprep.mubr.msk.bf16.mxu0 %vm3465_vm0, %v3464_v0 }
 0x3ec   : > { %2631 = vst.msk [vmem:[%s3851_s27 + $0x4] sm:$0xf] %vm961_vm3, %v1074_v18  ;;  %2787 = vmatprep.subr.bf16.mxu0 %v3464_v0 }
 0x3ef   : > { %v3083_v19 = vpop.eup %3082 }
 0x3f0   : > { %v1191_v20 = vmul.f32 %v3083_v19, %v3075_v61  ;;  %v2645_v19 = vld [vmem:[%s4182_s11] ss:$0 sm:$0xff] }
 0x3f2   : > { %2778 = vmatmul.mubr.msk.bf16.vlgmr.msra.gmra.mxu0 %vm902_vm2, %v1074_v18  ;;  %v1192_v21 = vpack.c.bf16 %v1191_v20, %v1191_v20 }
 0x3f3   : > { %2789 = vmatprep.mubr.msk.bf16.mxu0 %vm3465_vm0, %v3464_v0 }
 0x3f4   : > { %2634 = vst.msk [vmem:[%s3851_s27 + $0x8] sm:$0xf] %vm961_vm3, %v1192_v21 }
 0x40e   : > { %v1307_v22 = vpop.xlane.xlu1 %1306 }
 0x40f   : > { %3084 = vrcp.f32 %v1307_v22 }
 0x412   : > { %v1196_v23 = vpop.permute.xlu1 %1195 }
 0x413   : > { %v1201_v24 = vsel %vm968_vm4, %v1196_v23, 0 }
 0x414   : > { %2788 = vmatpush3.bf16.msra.mxu0 %v1201_v24 }
 0x415   : > { %2799 = vmatprep.subr.bf16.mxu0 %v3464_v0 }
 0x417   : > { %2790 = vmatmul.mubr.msk.bf16.vlgmr.msra.gmra.mxu0 %vm902_vm2, %v1192_v21 }
 0x418   : > { %2800 = vmatpush3.bf16.msra.mxu0 %v1319_v26  ;;  %2801 = vmatprep.mubr.msk.bf16.mxu0 %vm3465_vm0, %v3464_v0 }
 0x419   : > { %2813 = vmatprep.subr.bf16.mxu0 %v3464_v0 }
 0x41c   : > { %v3085_v27 = vpop.eup %3084 }
 0x41d   : > { %v1309_v28 = vmul.f32 %v3085_v27, %v3077_v4  ;;  %v3058_v4 = vld [vmem:[#allocation11 + $0x8] sm:$0xff]  }
 0x41e   : > { %v2649_v27 = vld [vmem:[%s4180_s9] ss:$0 sm:$0xff] }
 0x41f   : > { %v1310_v29 = vpack.c.bf16 %v1309_v28, %v1309_v28 }
 0x421   : > { %2637 = vst.msk [vmem:[%s3851_s27 + $0xc] sm:$0xf] %vm961_vm3, %v1310_v29  ;;  %2802 = vmatmul.mubr.msk.bf16.vlgmr.msra.gmra.mxu0 %vm902_vm2, %v1310_v29 }
 0x422   : > { %2817 = vmatprep.mubr.msk.bf16.mxu0 %vm3465_vm0, %v3464_v0  ;;  %2814 = vmatpush3.bf16.msra.mxu0 %v3058_v4 }
 0x423   : > { %2815 = vmatprep.subr.bf16.mxu0 %v3464_v0 }
 0x4aa   : > { %v1006_v30 = vpop.f32.mrf.mxu0 }
 0x4ab   : > { %1012 = vst.msk [vmem:[#allocation2] sm:$0xff] %vm902_vm2, %v1006_v30 }
 0x4ac   : > { %v2767_v31 = vpop.f32.mrf.mxu0 }
 0x4ae   : > { %v1009_v32 = vpop.f32.mrf.mxu0 }
 0x4b0   : > { %v2768_v33 = vpop.f32.mrf.mxu0 }
 0x4b2   : > { %v1119_v34 = vpop.f32.mrf.mxu0 }
 0x4b3   : > { %1126 = vrot.lane.b32.xlu1 %v1119_v34, %s4209_s3  ;;  %s4210_s3 = smov 24  }
 0x4b4   : > { %v2779_v35 = vpop.f32.mrf.mxu0 }
 0x4b6   : > { %v1122_v36 = vpop.f32.mrf.mxu0 }
 0x4b8   : > { %v2780_v37 = vpop.f32.mrf.mxu0 }
 0x4d7   : > { %v1237_v39 = vpop.f32.mrf.mxu0 }
 0x4d8   : > { %1244 = vrot.lane.b32.xlu0 %v1237_v39, %s4211_s5  ;;  %s3480_s5 = smov [#allocation18]  }
 0x4d9   : > { %v2791_v41 = vpop.f32.mrf.mxu0 }
 0x4db   : > { %v1240_v42 = vpop.f32.mrf.mxu0 }
 0x4dd   : > { %v2792_v43 = vpop.f32.mrf.mxu0 }
 0x4de   : > { %v829_v43 = vld [vmem:[#allocation6] sm:$0xff] }
 0x4e1   : > { %v1355_v44 = vpop.f32.mrf.mxu0 }
 0x4e2   : > { %1362 = vrot.lane.b32.xlu1 %v1355_v44, %s4210_s3  ;;  %s3320_s3 = sshll.u32 %s3480_s5, 4  ;;  %s3321_s3 = int_to_ptr.vmem [resolvable:$false] %s3320_s3 }
 0x4e3   : > { %v2803_v45 = vpop.f32.mrf.mxu0  ;;  %s3322_s30 = scalar_lea.vmem %s3321_s3, 512 }
 0x4e5   : > { %v1358_v46 = vpop.f32.mrf.mxu0 }
 0x4e7   : > { %v2804_v47 = vpop.f32.mrf.mxu0 }
 0x525   : > { %v1127_v48 = vpop.permute.xlu1 %1126 }
 0x526   : > { %1130 = vst.msk [vmem:[#allocation2] sm:$0xff] %vm1129_vm5, %v1127_v48 }
 0x54a   : > { %v1245_v49 = vpop.permute.xlu0 %1244 }
 0x54b   : > { %1248 = vst.msk [vmem:[#allocation2] sm:$0xff] %vm1247_vm6, %v1245_v49 }
 0x554   : > { %v1363_v50 = vpop.permute.xlu1 %1362 }
 0x555   : > { %1366 = vst.msk [vmem:[#allocation2] sm:$0xff] %vm1365_vm7, %v1363_v50 }
 0x55c   : > { %v1367_v51 = vld [vmem:[#allocation2] sm:$0xff] }
 0x55d   : > { %v1368_v52 = vpack.c.bf16 %v1367_v51, %v1367_v51 }
 0x55f   : > { %2810 = vmatmul.mubr.msk.bf16.vlgmr.msra.gmra.mxu1 %vm854_vm1, %v1368_v52 }
 0x560   : > { %2825 = vmatprep.mubr.msk.bf16.mxu1 %vm3465_vm0, %v3464_v0  ;;  %2822 = vmatpush3.bf16.msra.mxu1 %v3060_v7 }
 0x561   : > { %2823 = vmatprep.subr.bf16.mxu1 %v3464_v0 }
 0x564   : > { %2824 = vmatpush3.bf16.msra.mxu1 %v3061_v8 }
 0x565   : > { %2835 = vmatprep.subr.bf16.mxu1 %v3464_v0 }
 0x61f   : > { %v1429_v54 = vpop.f32.mrf.mxu1 }
 0x620   : > { %v1430_v55 = vadd.f32 %v2639_v53, %v1429_v54 }
 0x621   : > { %v2811_v56 = vpop.f32.mrf.mxu1 }
 0x622   : > { %v1435_v57 = vadd.f32 %v1430_v55, %v3783_v3  ;;  %v3059_v3 = vld [vmem:[#allocation11] sm:$0xff]  }
 0x623   : > { %v1432_v58 = vpop.f32.mrf.mxu1  ;;  %2816 = vmatpush3.bf16.msra.mxu0 %v3059_v3 }
 0x624   : > { %v1438_v59 = vsel %vm854_vm1, %v1435_v57, 0.0  ;;  %2829 = vmatprep.subr.bf16.mxu0 %v3464_v0 }
 0x625   : > { %1439 = vadd.xlane.f32.xlu0 %v1438_v59  ;;  %v2812_v60 = vpop.f32.mrf.mxu1 }
 0x626   : > { %2818 = vmatmul.mubr.msk.bf16.vlgmr.msra.gmra.mxu0 %vm854_vm1, %v1462_v6 }
 0x627   : > { %2831 = vmatprep.mubr.msk.bf16.mxu0 %vm3465_vm0, %v3464_v0 }
 0x6ae   : > { %v1440_v61 = vpop.xlane.xlu0 %1439 }
 0x6af   : > { %v1442_v62 = vmul.f32 0.03125, %v1440_v61 }
 0x6b1   : > { %v1443_v63 = vsub.f32 %v1435_v57, %v1442_v62 }
 0x6b3   : > { %v1444_v1 = vmul.f32 %v1443_v63, %v1443_v63 }
 0x6b5   : > { %v1445_v2 = vsel %vm854_vm1, %v1444_v1, 0.0 }
 0x6b6   : > { %1446 = vadd.xlane.f32.xlu1 %v1445_v2 }
 0x6e6   : > { %v1523_v20 = vpop.f32.mrf.mxu0 }
 0x6e7   : > { %v1524_v21 = vadd.f32 %v2645_v19, %v1523_v20 }
 0x6e8   : > { %v2819_v22 = vpop.f32.mrf.mxu0 }
 0x6e9   : > { %v3927_v23 = vpack.c.bf16 %v1524_v21, %v1524_v21 }
 0x6ea   : > { %v1526_v24 = vpop.f32.mrf.mxu0 }
 0x6eb   : > { %1710 = vrot.lane.b32.xlu0 %v3927_v23, %s3466_s24  ;;  %v1602_v25 = vsel %vm902_vm2, %v3927_v23, 0 }
 0x6ec   : > { %v2820_v26 = vpop.f32.mrf.mxu0  ;;  %2830 = vmatpush3.bf16.xpose.msra.mxu0 %v1602_v25 }
 0x6ed   : > { %2841 = vmatprep.subr.bf16.mxu0 %v3464_v0 }
 0x6ef   : > { %1827 = vrot.lane.b32.xlu0 %v3927_v23, %s3471_s20 }
 0x6f3   : > { %1944 = vrot.lane.b32.xlu0 %v3927_v23, %s3472_s12 }
 0x73f   : > { %v1447_v10 = vpop.xlane.xlu1 %1446 }
 0x740   : > { %v1448_v11 = vmul.f32 0.03125, %v1447_v10 }
 0x742   : > { %v1449_v12 = vadd.f32 1e-06, %v1448_v11 }
 0x744   : > { %3086 = vrsqrt.f32 %v1449_v12 }
 0x751   : > { %v3087_v9 = vpop.eup %3086 }
 0x752   : > { %v1451_v14 = vmul.f32 %v3087_v9, %v1443_v63 }
 0x754   : > { %v1456_v16 = vmul.f32 %v2643_v13, %v1451_v14 }
 0x756   : > { %v3917_v17 = vadd.f32 %v2644_v15, %v1456_v16 }
 0x758   : > { %v1529_v18 = vpack.c.bf16 %v3917_v17, %v3917_v17 }
 0x75a   : > { %2826 = vmatmul.mubr.msk.bf16.vlgmr.msra.gmra.mxu1 %vm854_vm1, %v1529_v18 }
 0x75b   : > { %2837 = vmatprep.mubr.msk.bf16.mxu1 %vm3465_vm0, %v3464_v0 }
 0x75d   : > { %v1711_v31 = vpop.permute.xlu0 %1710 }
 0x75e   : > { %v1716_v33 = vsel %vm902_vm2, %v1711_v31, 0 }
 0x761   : > { %v1828_v36 = vpop.permute.xlu0 %1827 }
 0x762   : > { %v1833_v38 = vsel %vm902_vm2, %v1828_v36, 0 }
 0x765   : > { %v1945_v39 = vpop.permute.xlu0 %1944 }
 0x766   : > { %v1950_v41 = vsel %vm902_vm2, %v1945_v39, 0 }
 0x81a   : > { %v1590_v28 = vpop.f32.mrf.mxu1 }
 0x81b   : > { %v1591_v29 = vadd.f32 %v2649_v27, %v1590_v28 }
 0x81c   : > { %v2827_v30 = vpop.f32.mrf.mxu1 }
 0x81d   : > { %v1597_v32 = vpack.c.bf16 %v1591_v29, %v1591_v29 }
 0x81e   : > { %v1593_v34 = vpop.f32.mrf.mxu1 }
 0x81f   : > { %1708 = vrot.lane.b32.xlu1 %v1597_v32, %s3466_s24  ;;  %2832 = vmatmul.mubr.msk.bf16.vlgmr.msra.gmra.mxu0 %vm902_vm2, %v1597_v32  ;;  %s4259_s24 = smov 88  }
 0x820   : > { %v2828_v35 = vpop.f32.mrf.mxu1  ;;  %2842 = vmatpush3.bf16.xpose.msra.mxu0 %v1716_v33  ;;  %2843 = vmatprep.mubr.msk.bf16.mxu0 %vm3465_vm0, %v3464_v0 }
 0x821   : > { %2853 = vmatprep.subr.bf16.mxu0 %v3464_v0 }
 0x823   : > { %1825 = vrot.lane.b32.xlu1 %v1597_v32, %s3471_s20 }
 0x827   : > { %1942 = vrot.lane.b32.xlu1 %v1597_v32, %s3472_s12  ;;  %s4263_s12 = smov 24  }
 0x891   : > { %v1709_v37 = vpop.permute.xlu1 %1708 }
 0x892   : > { %2844 = vmatmul.mubr.msk.bf16.vlgmr.msra.gmra.mxu0 %vm902_vm2, %v1709_v37 }
 0x893   : > { %2854 = vmatpush3.bf16.xpose.msra.mxu0 %v1833_v38  ;;  %2855 = vmatprep.mubr.msk.bf16.mxu0 %vm3465_vm0, %v3464_v0 }
 0x894   : > { %2865 = vmatprep.subr.bf16.mxu0 %v3464_v0 }
 0x895   : > { %v1826_v40 = vpop.permute.xlu1 %1825 }
 0x899   : > { %v1943_v42 = vpop.permute.xlu1 %1942 }
 0x89a   : > { %2856 = vmatmul.mubr.msk.bf16.vlgmr.msra.gmra.mxu0 %vm902_vm2, %v1826_v40 }
 0x89b   : > { %2866 = vmatpush3.bf16.xpose.msra.mxu0 %v1950_v41  ;;  %2867 = vmatprep.mubr.msk.bf16.mxu0 %vm3465_vm0, %v3464_v0 }
 0x89c   : > { %2877 = vmatprep.subr.bf16.mxu0 %v3464_v0 }
 0x8a2   : > { %2868 = vmatmul.mubr.msk.bf16.vlgmr.msra.gmra.mxu0 %vm902_vm2, %v1943_v42 }
 0x8a3   : > { %2881 = vmatprep.mubr.msk.bf16.mxu0 %vm3465_vm0, %v3464_v0 }
 0x8df   : > { %v1638_v44 = vpop.f32.mrf.mxu0 }
 0x8e0   : > { %v1639_v45 = vadd.f32 %v1638_v44, %v829_v43 }
 0x8e1   : > { %v2833_v46 = vpop.f32.mrf.mxu0 }
 0x8e2   : > { %v1644_v47 = vsel %vm902_vm2, %v1639_v45, -inf }
 0x8e3   : > { %1645 = vmax.xlane.f32.xlu0 %v1644_v47  ;;  %v1641_v48 = vpop.f32.mrf.mxu0 }
 0x8e5   : > { %v2834_v49 = vpop.f32.mrf.mxu0 }
 0x952   : > { %v1752_v50 = vpop.f32.mrf.mxu0 }
 0x953   : > { %v1753_v51 = vadd.f32 %v1752_v50, %v829_v43 }
 0x954   : > { %v2845_v52 = vpop.f32.mrf.mxu0 }
 0x955   : > { %v1758_v53 = vsel %vm902_vm2, %v1753_v51, -inf }
 0x956   : > { %1759 = vmax.xlane.f32.xlu1 %v1758_v53  ;;  %v1755_v54 = vpop.f32.mrf.mxu0 }
 0x958   : > { %v2846_v55 = vpop.f32.mrf.mxu0 }
 0x95a   : > { %v1869_v56 = vpop.f32.mrf.mxu0 }
 0x95b   : > { %v1870_v57 = vadd.f32 %v1869_v56, %v829_v43 }
 0x95c   : > { %v2857_v58 = vpop.f32.mrf.mxu0 }
 0x95d   : > { %v1875_v59 = vsel %vm902_vm2, %v1870_v57, -inf }
 0x95e   : > { %1876 = vmax.xlane.f32.xlu0 %v1875_v59  ;;  %v1872_v60 = vpop.f32.mrf.mxu0  ;;  %v3063_v59 = vld [vmem:[#allocation12] sm:$0xff]  }
 0x960   : > { %v2858_v61 = vpop.f32.mrf.mxu0 }
 0x962   : > { %v1986_v62 = vpop.f32.mrf.mxu0 }
 0x963   : > { %v1987_v63 = vadd.f32 %v1986_v62, %v829_v43 }
 0x964   : > { %v2869_v1 = vpop.f32.mrf.mxu0 }
 0x965   : > { %v1992_v2 = vsel %vm902_vm2, %v1987_v63, -inf }
 0x966   : > { %1993 = vmax.xlane.f32.xlu0 %v1992_v2  ;;  %v1989_v4 = vpop.f32.mrf.mxu0 }
 0x968   : > { %v2870_v3 = vpop.f32.mrf.mxu0 }
 0x96c   : > { %v1646_v5 = vpop.xlane.xlu0 %1645 }
 0x96d   : > { %v1647_v6 = vsub.f32 %v1639_v45, %v1646_v5 }
 0x96f   : > { %v1648_v7 = vmul.f32 1.442695, %v1647_v6 }
 0x971   : > { %3088 = vpow2.f32 %v1648_v7 }
 0x97e   : > { %v3089_v8 = vpop.eup %3088 }
 0x97f   : > { %v1650_v10 = vsel %vm902_vm2, %v3089_v8, 0.0 }
 0x980   : > { %1651 = vadd.xlane.f32.xlu1 %v1650_v10 }
 0x991   : > { %1658 = vrot.lane.b32.xlu1 %v3927_v23, %s3467_s26  ;;  %s4260_s26 = sshll.u32 %s3846_s8, 4 }
 0x992   : > { %s3982_s20 = scalar_lea.vmem [#allocation20], %s4260_s26 }
 0x9df   : > { %v1760_v11 = vpop.xlane.xlu1 %1759 }
 0x9e0   : > { %v1761_v12 = vsub.f32 %v1753_v51, %v1760_v11  ;;  %v2664_v11 = vld [vmem:[%s4184_s13] ss:$0 sm:$0xff] }
 0x9e2   : > { %v1762_v9 = vmul.f32 1.442695, %v1761_v12 }
 0x9e4   : > { %3090 = vpow2.f32 %v1762_v9 }
 0x9e7   : > { %v1877_v13 = vpop.xlane.xlu0 %1876 }
 0x9e8   : > { %v1878_v14 = vsub.f32 %v1870_v57, %v1877_v13  ;;  %v3062_v57 = vld [vmem:[#allocation12 + $0x8] sm:$0xff]  }
 0x9e9   : > { %2878 = vmatpush3.bf16.msra.mxu0 %v3062_v57 }
 0x9ea   : > { %v1879_v15 = vmul.f32 1.442695, %v1878_v14  ;;  %2879 = vmatprep.subr.bf16.mxu0 %v3464_v0 }
 0x9ec   : > { %3092 = vpow2.f32 %v1879_v15 }
 0x9ed   : > { %2880 = vmatpush3.bf16.msra.mxu0 %v3063_v59 }
 0x9ee   : > { %2893 = vmatprep.subr.bf16.mxu0 %v3464_v0 }
 0x9ef   : > { %v1994_v16 = vpop.xlane.xlu0 %1993 }
 0x9f0   : > { %v1995_v18 = vsub.f32 %v1987_v63, %v1994_v16 }
 0x9f1   : > { %v3091_v19 = vpop.eup %3090 }
 0x9f2   : > { %v1996_v20 = vmul.f32 1.442695, %v1995_v18  ;;  %v1764_v21 = vsel %vm902_vm2, %v3091_v19, 0.0 }
 0x9f3   : > { %1765 = vadd.xlane.f32.xlu0 %v1764_v21 }
 0x9f4   : > { %3094 = vpow2.f32 %v1996_v20 }
 0x9f9   : > { %v3093_v22 = vpop.eup %3092 }
 0x9fa   : > { %v1881_v24 = vsel %vm902_vm2, %v3093_v22, 0.0 }
 0x9fb   : > { %1882 = vadd.xlane.f32.xlu1 %v1881_v24 }
 0xa01   : > { %v3095_v25 = vpop.eup %3094 }
 0xa02   : > { %v1998_v26 = vsel %vm902_vm2, %v3095_v25, 0.0 }
 0xa03   : > { %1999 = vadd.xlane.f32.xlu0 %v1998_v26  ;;  %v3065_v26 = vld [vmem:[#allocation14] sm:$0xff]  }
 0xa09   : > { %v1652_v27 = vpop.xlane.xlu1 %1651 }
 0xa0a   : > { %3096 = vrcp.f32 %v1652_v27  ;;  %v3067_v27 = vld [vmem:[%s4187_s16 + $0x10] sm:$0xff]  }
 0xa0c   : > { %1889 = vrot.lane.b32.xlu1 %v3927_v23, %s3468_s1  ;;  %s4261_s1 = smov 8  }
 0xa0d   : > { %v1659_v28 = vpop.permute.xlu1 %1658 }
 0xa0e   : > { %v1664_v29 = vsel %vm968_vm4, %v1659_v28, 0 }
 0xa0f   : > { %2836 = vmatpush3.bf16.msra.mxu1 %v1664_v29 }
 0xa10   : > { %2006 = vrot.lane.b32.xlu1 %v3927_v23, %s3470_s29  ;;  %2847 = vmatprep.subr.bf16.mxu1 %v3464_v0  ;;  %s4262_s29 = smov 16  }
 0xa17   : > { %v3097_v30 = vpop.eup %3096 }
 0xa18   : > { %v1654_v31 = vmul.f32 %v3097_v30, %v3089_v8 }
 0xa19   : > { %1772 = vrot.lane.b32.xlu0 %v3927_v23, %s4259_s24  ;;  %s4214_s24 = sshll.u32 %s3620_s4, 8 }
 0xa1a   : > { %v1655_v32 = vpack.c.bf16 %v1654_v31, %v1654_v31 }
 0xa1c   : > { %1656 = vst.msk [vmem:[%s3982_s20] sm:$0xf] %vm961_vm3, %v1655_v32  ;;  %2838 = vmatmul.mubr.msk.bf16.vlgmr.msra.gmra.mxu1 %vm902_vm2, %v1655_v32  ;;  %v2668_v32 = vld [vmem:[%s4189_s18 + $0x1] ss:$0 sm:$0xff] }
 0xa1d   : > { %2849 = vmatprep.mubr.msk.bf16.mxu1 %vm3465_vm0, %v3464_v0 }
 0xa7c   : > { %v1766_v33 = vpop.xlane.xlu0 %1765 }
 0xa7d   : > { %3098 = vrcp.f32 %v1766_v33 }
 0xa84   : > { %v1883_v34 = vpop.xlane.xlu1 %1882 }
 0xa85   : > { %3100 = vrcp.f32 %v1883_v34  ;;  %v2669_v34 = vld [vmem:[%s4190_s19 + $0x1] ss:$0 sm:$0xff] }
 0xa88   : > { %v1890_v41 = vpop.permute.xlu1 %1889 }
 0xa89   : > { %v1895_v43 = vsel %vm968_vm4, %v1890_v41, 0 }
 0xa8a   : > { %v3099_v35 = vpop.eup %3098 }
 0xa8b   : > { %v1768_v36 = vmul.f32 %v3099_v35, %v3091_v19 }
 0xa8c   : > { %v2000_v23 = vpop.xlane.xlu0 %1999  ;;  %v2007_v46 = vpop.permute.xlu1 %2006 }
 0xa8d   : > { %3102 = vrcp.f32 %v2000_v23  ;;  %v1769_v37 = vpack.c.bf16 %v1768_v36, %v1768_v36  ;;  %v2012_v48 = vsel %vm968_vm4, %v2007_v46, 0 }
 0xa8f   : > { %2656 = vst.msk [vmem:[%s3982_s20 + $0x4] sm:$0xf] %vm961_vm3, %v1769_v37 }
 0xa90   : > { %v1773_v38 = vpop.permute.xlu0 %1772 }
 0xa91   : > { %v1778_v39 = vsel %vm968_vm4, %v1773_v38, 0  ;;  %v3069_v38 = vld [vmem:[%s4187_s16] sm:$0xff]  }
 0xa92   : > { %v3101_v40 = vpop.eup %3100  ;;  %2848 = vmatpush3.bf16.msra.mxu1 %v1778_v39  ;;  %v2670_v39 = vld [vmem:[#allocation15] ss:$0 sm:$0xff] }
 0xa93   : > { %2859 = vmatprep.subr.bf16.mxu1 %v3464_v0  ;;  %v1885_v42 = vmul.f32 %v3101_v40, %v3093_v22 }
 0xa95   : > { %2850 = vmatmul.mubr.msk.bf16.vlgmr.msra.gmra.mxu1 %vm902_vm2, %v1769_v37  ;;  %v1886_v44 = vpack.c.bf16 %v1885_v42, %v1885_v42  ;;  %v3068_v37 = vld [vmem:[%s4187_s16 + $0x8] sm:$0xff]  }
 0xa96   : > { %2860 = vmatpush3.bf16.msra.mxu1 %v1895_v43  ;;  %2861 = vmatprep.mubr.msk.bf16.mxu1 %vm3465_vm0, %v3464_v0 }
 0xa97   : > { %2871 = vmatprep.subr.bf16.mxu1 %v3464_v0  ;;  %2659 = vst.msk [vmem:[%s3982_s20 + $0x8] sm:$0xf] %vm961_vm3, %v1886_v44 }
 0xa9a   : > { %v3103_v45 = vpop.eup %3102 }
 0xa9b   : > { %v2002_v47 = vmul.f32 %v3103_v45, %v3095_v25  ;;  %v3064_v25 = vld [vmem:[#allocation14 + $0x8] sm:$0xff]  }
 0xa9d   : > { %2862 = vmatmul.mubr.msk.bf16.vlgmr.msra.gmra.mxu1 %vm902_vm2, %v1886_v44  ;;  %v2003_v49 = vpack.c.bf16 %v2002_v47, %v2002_v47 }
 0xa9e   : > { %2872 = vmatpush3.bf16.msra.mxu1 %v2012_v48  ;;  %2873 = vmatprep.mubr.msk.bf16.mxu1 %vm3465_vm0, %v3464_v0 }
 0xa9f   : > { %2662 = vst.msk [vmem:[%s3982_s20 + $0xc] sm:$0xf] %vm961_vm3, %v2003_v49  ;;  %2885 = vmatprep.subr.bf16.mxu1 %v3464_v0 }
 0xaa5   : > { %2874 = vmatmul.mubr.msk.bf16.vlgmr.msra.gmra.mxu1 %vm902_vm2, %v2003_v49 }
 0xaa6   : > { %2889 = vmatprep.mubr.msk.bf16.mxu1 %vm3465_vm0, %v3464_v0  ;;  %2886 = vmatpush3.bf16.msra.mxu1 %v3064_v25 }
 0xaa7   : > { %2887 = vmatprep.subr.bf16.mxu1 %v3464_v0 }
 0xaaa   : > { %2888 = vmatpush3.bf16.msra.mxu1 %v3065_v26 }
 0xadc   : > { %v1700_v50 = vpop.f32.mrf.mxu1 }
 0xadd   : > { %1706 = vst.msk [vmem:[#allocation2] sm:$0xff] %vm902_vm2, %v1700_v50 }
 0xade   : > { %v2839_v51 = vpop.f32.mrf.mxu1 }
 0xae0   : > { %v1703_v52 = vpop.f32.mrf.mxu1 }
 0xae2   : > { %v2840_v53 = vpop.f32.mrf.mxu1 }
 0xb55   : > { %v1814_v54 = vpop.f32.mrf.mxu1 }
 0xb56   : > { %1821 = vrot.lane.b32.xlu0 %v1814_v54, %s4261_s1 }
 0xb57   : > { %v2851_v55 = vpop.f32.mrf.mxu1 }
 0xb59   : > { %v1817_v56 = vpop.f32.mrf.mxu1 }
 0xb5b   : > { %v2852_v58 = vpop.f32.mrf.mxu1 }
 0xb5d   : > { %v1931_v60 = vpop.f32.mrf.mxu1 }
 0xb5e   : > { %1938 = vrot.lane.b32.xlu1 %v1931_v60, %s4262_s29  ;;  %s4067_s29 = scalar_lea.hbm %s4192_s21, %s4214_s24 }
 0xb5f   : > { %v2863_v61 = vpop.f32.mrf.mxu1 }
 0xb61   : > { %v1934_v62 = vpop.f32.mrf.mxu1 }
 0xb63   : > { %v2864_v63 = vpop.f32.mrf.mxu1 }
 0xb65   : > { %v2048_v1 = vpop.f32.mrf.mxu1 }
 0xb66   : > { %2055 = vrot.lane.b32.xlu0 %v2048_v1, %s4263_s12  ;;  %s2369_s12 = sshll.u32 %s3851_s27, 4  ;;  %s4070_s12 = int_to_ptr.vmem [resolvable:$true] %s2369_s12 }
 0xb67   : > { %v2875_v2 = vpop.f32.mrf.mxu1  ;;  %s3316_s25 = scalar_lea.vmem %s4070_s12, 256  ;;  %p3323_p13 = scmp.lt.s32.totalorder %s4070_s12, %s3321_s3 }
 0xb68   : > { %p3317_p10 = scmp.ne.s32.totalorder %s4070_s12, %s3316_s25  ;;  %p3324_p8 = scmp.lt.s32.totalorder %s3322_s30, %s3316_s25 }
 0xb69   : > { %v2051_v4 = vpop.f32.mrf.mxu1 }
 0xb6a   : > { %p3318_p4 = pnand %p3317_p10, %p4264_p3  ;;  %p3325_p11 = por %p3324_p8, %p3323_p13 }
 0xb6b   : > { %v2876_v3 = vpop.f32.mrf.mxu1 }
 0xb6c   : > { %p3319_p7 = pneg %p3318_p4 }
 0xb6e   : > { %p3326_p0 = pnand %p3325_p11, %p3319_p7 }
 0xbc8   : > { %v1822_v5 = vpop.permute.xlu0 %1821 }
 0xbc9   : > { %1824 = vst.msk [vmem:[#allocation2] sm:$0xff] %vm1129_vm5, %v1822_v5 }
 0xbd0   : > { %v1939_v6 = vpop.permute.xlu1 %1938 }
 0xbd1   : > { %1941 = vst.msk [vmem:[#allocation2] sm:$0xff] %vm1247_vm6, %v1939_v6 }
 0xbd8   : > { %v2056_v7 = vpop.permute.xlu0 %2055 }
 0xbd9   : > { %2058 = vst.msk [vmem:[#allocation2] sm:$0xff] %vm1365_vm7, %v2056_v7 }
 0xbe0   : > { %v2059_v8 = vld [vmem:[#allocation2] sm:$0xff] }
 0xbe1   : > { %v2060_v10 = vpack.c.bf16 %v2059_v8, %v2059_v8 }
 0xbe3   : > { %2882 = vmatmul.mubr.msk.bf16.vlgmr.msra.gmra.mxu0 %vm854_vm1, %v2060_v10 }
 0xbe4   : > { %2901 = vmatprep.mubr.msk.bf16.mxu0 %vm3465_vm0, %v3464_v0 }
 0xca3   : > { %v2121_v12 = vpop.f32.mrf.mxu0 }
 0xca4   : > { %v2122_v9 = vadd.f32 %v2664_v11, %v2121_v12 }
 0xca5   : > { %v2883_v13 = vpop.f32.mrf.mxu0 }
 0xca6   : > { %v2127_v14 = vadd.f32 %v2122_v9, %v3917_v17  ;;  %v3066_v17 = vld [vmem:[%s4187_s16 + $0x18] sm:$0xff]  }
 0xca7   : > { %v2124_v15 = vpop.f32.mrf.mxu0  ;;  %2894 = vmatpush3.bf16.msra.mxu0 %v3066_v17 }
 0xca8   : > { %v2130_v16 = vsel %vm854_vm1, %v2127_v14, 0.0  ;;  %2895 = vmatprep.subr.bf16.mxu0 %v3464_v0 }
 0xca9   : > { %2131 = vadd.xlane.f32.xlu1 %v2130_v16  ;;  %v2884_v18 = vpop.f32.mrf.mxu0 }
 0xcab   : > { %2896 = vmatpush3.bf16.msra.mxu0 %v3067_v27 }
 0xcac   : > { %2897 = vmatprep.subr.bf16.mxu0 %v3464_v0 }
 0xcaf   : > { %2898 = vmatpush3.bf16.msra.mxu0 %v3068_v37 }
 0xcb0   : > { %2899 = vmatprep.subr.bf16.mxu0 %v3464_v0  ;;  %v2674_v0 = vld [vmem:[%s4188_s17] ss:$0 sm:$0xff] }
 0xcb3   : > { %2900 = vmatpush3.bf16.msra.mxu0 %v3069_v38 }
 0xd32   : > { %v2132_v19 = vpop.xlane.xlu1 %2131 }
 0xd33   : > { %v2133_v20 = vmul.f32 0.03125, %v2132_v19 }
 0xd35   : > { %v2134_v21 = vsub.f32 %v2127_v14, %v2133_v20 }
 0xd37   : > { %v2135_v22 = vmul.f32 %v2134_v21, %v2134_v21 }
 0xd39   : > { %v2136_v24 = vsel %vm854_vm1, %v2135_v22, 0.0 }
 0xd3a   : > { %2137 = vadd.xlane.f32.xlu0 %v2136_v24 }
 0xdc3   : > { %v2138_v28 = vpop.xlane.xlu0 %2137 }
 0xdc4   : > { %v2139_v29 = vmul.f32 0.03125, %v2138_v28 }
 0xdc6   : > { %v2140_v30 = vadd.f32 1e-06, %v2139_v29 }
 0xdc8   : > { %3104 = vrsqrt.f32 %v2140_v30 }
 0xdd5   : > { %v3105_v31 = vpop.eup %3104 }
 0xdd6   : > { %v2142_v33 = vmul.f32 %v3105_v31, %v2134_v21 }
 0xdd8   : > { %v2147_v35 = vmul.f32 %v2668_v32, %v2142_v33 }
 0xdda   : > { %v2152_v36 = vadd.f32 %v2669_v34, %v2147_v35 }
 0xddc   : > { %v2153_v23 = vpack.c.bf16 %v2152_v36, %v2152_v36 }
 0xdde   : > { %2890 = vmatmul.mubr.msk.bf16.vlgmr.msra.gmra.mxu1 %vm854_vm1, %v2153_v23 }
 0xe9e   : > { %v2214_v40 = vpop.f32.mrf.mxu1 }
 0xe9f   : > { %v2215_v41 = vadd.f32 %v2670_v39, %v2214_v40 }
 0xea0   : > { %v2891_v42 = vpop.f32.mrf.mxu1 }
 0xea1   : > { %v2220_v43 = vmax.f32 %v2215_v41, 0.0 }
 0xea2   : > { %v2217_v44 = vpop.f32.mrf.mxu1 }
 0xea3   : > { %v2221_v45 = vpack.c.bf16 %v2220_v43, %v2220_v43 }
 0xea4   : > { %v2892_v46 = vpop.f32.mrf.mxu1 }
 0xea5   : > { %2902 = vmatmul.mubr.msk.bf16.vlgmr.msra.gmra.mxu0 %vm2261_vm8, %v2221_v45 }
 0xf65   : > { %v2299_v47 = vpop.f32.mrf.mxu0 }
 0xf66   : > { %v2300_v48 = vadd.f32 %v2674_v0, %v2299_v47 }
 0xf67   : > { %v2903_v49 = vpop.f32.mrf.mxu0 }
 0xf68   : > { %v2305_v50 = vadd.f32 %v2300_v48, %v2152_v36 }
 0xf69   : > { %v2302_v51 = vpop.f32.mrf.mxu0 }
 0xf6a   : > { %v2308_v52 = vsel %vm854_vm1, %v2305_v50, 0.0 }
 0xf6b   : > { %2309 = vadd.xlane.f32.xlu0 %v2308_v52  ;;  %v2904_v53 = vpop.f32.mrf.mxu0 }
 0xff4   : > { %v2310_v54 = vpop.xlane.xlu0 %2309 }
 0xff5   : > { %v2311_v55 = vmul.f32 0.03125, %v2310_v54 }
 0xff7   : > { %v4055_v56 = vsub.f32 %v2305_v50, %v2311_v55 }
 0xff9   : > { %v2313_v57 = vmul.f32 %v4055_v56, %v4055_v56 }
 0xffb   : > { %v2314_v58 = vsel %vm854_vm1, %v2313_v57, 0.0 }
 0xffc   : > { %2315 = vadd.xlane.f32.xlu1 %v2314_v58 }
 0xffd   : > { %3329 = shalt.err (!%p3326_p0)
}
 0xffe   : > { %s3330_s27 = scalar_lea.hbm %s4067_s29, 256  ;;  %s3334_s1 = scalar_lea.hbm %s4192_s21, 512 }
 0xfff   : > { %p3331_p12 = scmp.ne.s32.totalorder %s4067_s29, %s3330_s27  ;;  %p3335_p2 = scmp.lt.s32.totalorder %s4067_s29, %s4192_s21 }
0x1000   : > { %p3336_p5 = scmp.lt.s32.totalorder %s3334_s1, %s3330_s27 }
0x1001   : > { %p3332_p1 = pnand %p3331_p12, %p4264_p3 }
0x1002   : > { %p3337_p6 = por %p3336_p5, %p3335_p2 }
0x1003   : > { %p3333_p9 = pneg %p3332_p1 }
0x1005   : > { %p3338_p10 = pnand %p3337_p6, %p3333_p9 }
0x1007   : > { %3341 = shalt.err (!%p3338_p10)
}
0x1008   : > { %s3481_s25 = smov 4   ;;  %s4265_s3 = smov 64  }
0x1009   : > { %2938 = dma.vmem_to_hbm [thread:$0]  (%p4264_p3), %s4070_s12, 256, %s4067_s29, %s4072_s2, %s4265_s3, %s4265_s3, %s3481_s25  }
0x100a   : > { %s4266_s30 = sshll.u32 %s3620_s4, 8  ;;  %s2385_s26 = sshll.u32 %s3982_s20, 4  ;;  %s2386_s26 = int_to_ptr.vmem [resolvable:$true] %s2385_s26 }
0x100b   : > { %s4103_s27 = scalar_lea.hbm %s4193_s22, %s4266_s30  ;;  %s3342_s1 = scalar_lea.vmem %s2386_s26, 256 }
0x100c   : > { %p3343_p4 = scmp.ne.s32.totalorder %s2386_s26, %s3342_s1  ;;  %s3482_s5 = smov [#allocation20]  }
0x100d   : > { %s3346_s0 = sshll.u32 %s3482_s5, 4  ;;  %s3347_s0 = int_to_ptr.vmem [resolvable:$false] %s3346_s0 }
0x100e   : > { %p3344_p7 = pnand %p3343_p4, %p4264_p3  ;;  %s3348_s7 = scalar_lea.vmem %s3347_s0, 512 }
0x100f   : > { %p3349_p8 = scmp.lt.s32.totalorder %s2386_s26, %s3347_s0  ;;  %p3350_p11 = scmp.lt.s32.totalorder %s3348_s7, %s3342_s1 }
0x1010   : > { %p3345_p13 = pneg %p3344_p7 }
0x1011   : > { %p3351_p0 = por %p3350_p11, %p3349_p8 }
0x1013   : > { %p3352_p12 = pnand %p3351_p0, %p3345_p13 }
0x1015   : > { %3355 = shalt.err (!%p3352_p12)
}
0x1016   : > { %s3356_s20 = scalar_lea.hbm %s4103_s27, 256  ;;  %s3360_s30 = scalar_lea.hbm %s4193_s22, 512 }
0x1017   : > { %p3357_p1 = scmp.ne.s32.totalorder %s4103_s27, %s3356_s20  ;;  %p3361_p5 = scmp.lt.s32.totalorder %s4103_s27, %s4193_s22 }
0x1018   : > { %p3362_p6 = scmp.lt.s32.totalorder %s3360_s30, %s3356_s20 }
0x1019   : > { %p3358_p9 = pnand %p3357_p1, %p4264_p3 }
0x101a   : > { %p3363_p10 = por %p3362_p6, %p3361_p5 }
0x101b   : > { %p3359_p2 = pneg %p3358_p9 }
0x101d   : > { %p3364_p4 = pnand %p3363_p10, %p3359_p2 }
0x101f   : > { %3367 = shalt.err (!%p3364_p4)
}
0x1020   : > { %2939 = dma.vmem_to_hbm [thread:$0]  (%p4264_p3), %s2386_s26, 256, %s4103_s27, %s4072_s2, %s4265_s3, %s4265_s3, %s3481_s25  }
0x1021   : > { %s2619_s7 = sshll.u32 %s3846_s8, 3  ;;  %v2680_v63 = vld [vmem:[%s4189_s18 + $0x2] ss:$0 sm:$0xff]  ;;  %s2685_s29 = sshll.u32 %s3620_s4, 7 }
0x1022   : > { %v2681_v2 = vld [vmem:[%s4190_s19 + $0x2] ss:$0 sm:$0xff]  ;;  %s802_s2 = scalar_lea.vmem [#allocation17], %s2619_s7  ;;  %s4267_s26 = sld [smem:[#allocation44_spill]] }
0x1023   : > { %s2356_s25 = sshll.u32 %s802_s2, 4  ;;  %s2333_s30 = scalar_lea.sflag [#allocation5], %s3846_s8  ;;  %s2357_s25 = int_to_ptr.vmem [resolvable:$true] %s2356_s25 }
0x1024   : > { %s3368_s24 = scalar_lea.vmem %s2357_s25, 128  ;;  %s3483_s23 = smov [#allocation17]  }
0x1025   : > { %p3369_p7 = scmp.ne.s32.totalorder %s2357_s25, %s3368_s24  ;;  %s3372_s0 = sshll.u32 %s3483_s23, 4  ;;  %s3373_s0 = int_to_ptr.vmem [resolvable:$false] %s3372_s0 }
0x1026   : > { %s3374_s4 = scalar_lea.vmem %s3373_s0, 256  ;;  %p3375_p11 = scmp.lt.s32.totalorder %s2357_s25, %s3373_s0 }
0x1027   : > { %p3370_p13 = pnand %p3369_p7, %p4264_p3  ;;  %p3376_p0 = scmp.lt.s32.totalorder %s3374_s4, %s3368_s24 }
0x1028   : > { %s2354_s12 = scalar_lea.hbm %s4267_s26, %s2685_s29 }
0x1029   : > { %p3371_p8 = pneg %p3370_p13  ;;  %p3377_p12 = por %p3376_p0, %p3375_p11 }
0x102b   : > { %p3378_p1 = pnand %p3377_p12, %p3371_p8 }
0x1085   : > { %v2316_v59 = vpop.xlane.xlu1 %2315 }
0x1086   : > { %v2317_v60 = vmul.f32 0.03125, %v2316_v59 }
0x1088   : > { %v2318_v61 = vadd.f32 1e-06, %v2317_v60 }
0x108a   : > { %3106 = vrsqrt.f32 %v2318_v61 }
0x1097   : > { %v3107_v62 = vpop.eup %3106 }
0x1098   : > { %v2320_v1 = vmul.f32 %v3107_v62, %v4055_v56 }
0x109a   : > { %v2325_v4 = vmul.f32 %v2680_v63, %v2320_v1 }
0x109c   : > { %v2330_v3 = vadd.f32 %v2681_v2, %v2325_v4 }
0x109e   : > { %2331 = vst.msk [vmem:[%s802_s2] sm:$0xff] %vm854_vm1, %v2330_v3 }
0x109f   : > { %3381 = shalt.err (!%p3378_p1)
}
0x10a0   : > { %s3382_s7 = scalar_lea.hbm %s2354_s12, 128  ;;  %s3386_s5 = scalar_lea.hbm %s4267_s26, 256 }
0x10a1   : > { %p3383_p9 = scmp.ne.s32.totalorder %s2354_s12, %s3382_s7  ;;  %p3387_p6 = scmp.lt.s32.totalorder %s2354_s12, %s4267_s26 }
0x10a2   : > { %p3388_p10 = scmp.lt.s32.totalorder %s3386_s5, %s3382_s7 }
0x10a3   : > { %p3384_p2 = pnand %p3383_p9, %p4264_p3 }
0x10a4   : > { %p3389_p4 = por %p3388_p10, %p3387_p6 }
0x10a5   : > { %p3385_p5 = pneg %p3384_p2 }
0x10a7   : > { %p3390_p7 = pnand %p3389_p4, %p3385_p5 }
0x10a9   : > { %3393 = shalt.err (!%p3390_p7)
}
0x10aa   : > { %2937 = dma.vmem_to_hbm [thread:$0]  (%p4264_p3), %s2357_s25, 128, %s2354_s12, %s2333_s30  }
0x10ab PF: > { %s4268_s2 = sld [smem:[#allocation30_spill]] }
0x10ac   : > { %s4269_s3 = sld [smem:[#allocation28_spill]] }
0x10ad   : > { %s4270_s27 = sld [smem:[#allocation33_spill]] }
0x10b1   : > { %p2994_p13 = scmp.ge.s32.totalorder %s4268_s2, 2 }
0x10b2   : > { %s2400_s24 = sand.u32 1, %s4269_s3  }
0x10b3   : > { %p4271_p8 = scmp.ne.s32.totalorder %s4270_s27, 0  ;;  %s2401_s23 = scalar_lea.sflag [#allocation5], %s2400_s24 }
0x10b5   : > { %p2969_p11 = pnand %p2994_p13, %p4271_p8 }
0x10b7   : > { %p2970_p0 = pneg %p2969_p11 }
0x10b9   : > { %3431 = dma.done.wait (%p2970_p0), %s2401_s23, 128  }
0x10ba   : > { %3433 = vsyncadd (%p2970_p0), %s2401_s23, 4294967168  ;;  %s4272_s0 = sadd.s32 4294967294, %s4268_s2  }
0x10bb   : > { %s2409_s4 = sand.u32 1, %s4272_s0  }
0x10bc   : > { %s2410_s7 = scalar_lea.sflag [#allocation19], %s2409_s4 }
0x10bd   : > { %3435 = dma.done.wait (%p2970_p0), %s2410_s7, 512  }
0x10be   : > { %3437 = vsyncadd (%p2970_p0), %s2410_s7, 4294966784  ;;  %s4273_s30 = sld [smem:[#allocation31_spill]]  ;;  %s4276_s3 = smov %s3444_s28 }
0x10bf   : > { %s4274_s6 = sld [smem:[#allocation29_spill]] }
0x10c0   : > { %s4275_s29 = sld [smem:[#allocation32_spill]] }
0x10c4   : > { %p41_p3 = scmp.ge.s32.totalorder %s4273_s30, 4  }
0x10c5   : > { %s4277_s28 = smov %s4274_s6 }
0x10c6   :  { %43 = sbr.rel (!%p41_p3) target bundleno = 22 (0x16), region = 209 }
0x10cb   :  { %2424 = vsyncpa [#allocation4], 1 }
0x10cc   :  { %2426 = vsyncpa [#allocation4 + $0x1], 1 }
0x10cd   :  { %2427 = vsyncpa [#allocation7], 1 }
0x10ce   :  { %2428 = vsyncpa [#allocation10], 1 }
0x10cf   :  { %2429 = vsyncpa [#allocation13], 1 }
0x10d0   :  { %2430 = vsyncpa [#allocation16], 1 }
0x10d1   :  { %2431 = vsyncpa [#allocation5], 1 }
0x10d2   :  { %2433 = vsyncpa [#allocation5 + $0x1], 1 }
0x10d3   :  { %2434 = vsyncpa [#allocation19], 1 }
0x10d4   :  { %2436 = vsyncpa [#allocation19 + $0x1], 1 }

</bundles_post_ra>
